<compile_context>
chip_gen: v7x
topology: tpu7x:2x2x1
jax: 0.10.0
libtpu: 0.0.40
codegen_flags: <defaults>
</compile_context>

<pallas_src>
import functools
import math

import numpy as np
import jax
import jax.numpy as jnp
from jax.experimental import pallas as pl
from jax.experimental.pallas import tpu as pltpu


def _round_up(x, m):
    return -(-x // m) * m


# ----------------------------------------------------------------------------
# Kernel
# ----------------------------------------------------------------------------
def _actor_kernel(floor_ref, elv_ref, place_ref,
                  wf0_ref, bf0_ref, wf1_ref, bf1_ref,
                  we0_ref, be0_ref, we1_ref, be1_ref,
                  wp_ref, bp_ref, w1_ref, b1_ref, w2_ref, b2_ref,
                  out_ref, *, lift_num):
    f32 = jnp.float32
    bf16 = jnp.bfloat16

    def dot(a, w_ref):
        # bf16 x bf16 MXU matmul, f32 accumulation.
        return jnp.dot(a.astype(bf16), w_ref[...], preferred_element_type=f32)

    def conv_relu_pool(x, w_ref, b_ref):
        # maxpool2(relu(conv1d_k3p1(x))) as ONE fused matmul: columns are
        # [even conv positions | odd conv positions] (each half 128-aligned).
        y = jnp.maximum(dot(x, w_ref) + b_ref[...], 0.0)
        n = y.shape[-1] // 2
        return jnp.maximum(y[:, :n], y[:, n:])

    f = conv_relu_pool(floor_ref[...], wf0_ref, bf0_ref)      # (TB, nf0) -> ...
    f = conv_relu_pool(f, wf1_ref, bf1_ref)                   # (TB, nf1)
    e = conv_relu_pool(elv_ref[...], we0_ref, be0_ref)
    e = conv_relu_pool(e, we1_ref, be1_ref)                   # (TB, ne1)
    p = jnp.maximum(dot(place_ref[...], wp_ref) + bp_ref[...], 0.0)   # (TB, 128)

    x = jnp.concatenate([f, e, p], axis=-1)                   # lane-aligned pieces
    h = jnp.maximum(dot(x, w1_ref) + b1_ref[...], 0.0)        # (TB, 384)
    logits = dot(h, w2_ref) + b2_ref[...]                     # (TB, lift*128)

    # TODO(synk): only the default softmax_dim=-1 is implemented.
    gw = logits.shape[-1] // lift_num                          # 128-lane stripes
    probs = []
    for g in range(lift_num):
        z = logits[:, g * gw:(g + 1) * gw]
        z = z - jnp.max(z, axis=-1, keepdims=True)
        ez = jnp.exp(z)                                        # pad cols -> exp(-1e30)=0
        inv = pl.reciprocal(jnp.sum(ez, axis=-1, keepdims=True))
        probs.append(ez * inv)
    # single lane-dense store of the whole (TB, lift*128) output tile
    out_ref[...] = jnp.concatenate(probs, axis=-1).astype(out_ref.dtype)


# ----------------------------------------------------------------------------
# One-time parameter re-packing (host side, NumPy)
# ----------------------------------------------------------------------------
def _conv_pool_fused(w, b, L, k_pad, n_pad):
    """Fold conv1d(k=3,pad=1)+relu+maxpool(2) into one fused dense matmul.

    Returns W: (k_pad, 2*n_pad), bias: (1, 2*n_pad).  Columns [0:n_pad) are the
    even conv-output positions, [n_pad:2*n_pad) the odd ones (each zero-padded
    from Cout*(L//2) to n_pad).  Input rows 0..Cin*L-1 are channel-major
    (ci*L + li); rows up to k_pad are zero.
    """
    w = np.asarray(w, np.float32)
    b = np.asarray(b, np.float32)
    Cout, Cin, K = w.shape
    half = L // 2
    n_real = Cout * half
    li = np.arange(L)
    m = np.arange(half)

    def one(parity):
        lo = 2 * m + parity                          # conv output positions kept
        k = li[:, None] - lo[None, :] + 1            # (L, half) tap index
        valid = (k >= 0) & (k < K)
        kc = np.clip(k, 0, K - 1)
        taps = w[:, :, kc] * valid.astype(np.float32)          # (Cout, Cin, L, half)
        W = taps.transpose(1, 2, 0, 3).reshape(Cin * L, n_real)
        Wp = np.zeros((k_pad, n_pad), np.float32)
        Wp[:Cin * L, :n_real] = W
        bp = np.zeros((n_pad,), np.float32)
        bp[:n_real] = np.repeat(b, half)
        return Wp, bp

    We, be = one(0)
    Wo, bo = one(1)
    return (np.concatenate([We, Wo], axis=1),
            np.concatenate([be, bo])[None, :])


def pack_actor_params(params, building_height, mpf, mpe, action_dim, lift_num):
    """Repack PyTorch-style Actor params into MXU-friendly bf16 matrices (once)."""
    Lf = building_height * mpf
    Le = mpe
    assert Lf % 4 == 0 and Le % 4 == 0, "lengths must survive two maxpool(2)"

    nf0 = _round_up(32 * (Lf // 2), 128)
    wf0, bf0 = _conv_pool_fused(params["Wf0"], params["bf0"], Lf, 2 * Lf, nf0)
    nf1 = _round_up(32 * (Lf // 4), 128)
    wf1, bf1 = _conv_pool_fused(params["Wf1"], params["bf1"], Lf // 2, nf0, nf1)

    ne0 = _round_up(16 * (Le // 2), 128)
    we0, be0 = _conv_pool_fused(params["We0"], params["be0"], Le, lift_num * Le, ne0)
    ne1 = _round_up(16 * (Le // 4), 128)
    we1, be1 = _conv_pool_fused(params["We1"], params["be1"], Le // 2, ne0, ne1)

    # place Linear (lift_num -> 16), padded to a 128-lane stripe
    np_pad = 128
    wp = np.zeros((lift_num, np_pad), np.float32)
    wp[:, :16] = np.asarray(params["Wp"], np.float32).T
    bp = np.zeros((1, np_pad), np.float32)
    bp[0, :16] = np.asarray(params["bp"], np.float32)

    # FC1: block-packed over the [floor | elv | place] lane-aligned concat
    nf_real = 32 * (Lf // 4)
    ne_real = 16 * (Le // 4)
    W1 = np.asarray(params["W1"], np.float32)                  # (360, D)
    N1 = _round_up(360, 128)                                   # 384
    K1 = nf1 + ne1 + np_pad
    w1 = np.zeros((K1, N1), np.float32)
    w1[0:nf_real, :360] = W1[:, :nf_real].T
    w1[nf1:nf1 + ne_real, :360] = W1[:, nf_real:nf_real + ne_real].T
    w1[nf1 + ne1:nf1 + ne1 + 16, :360] = W1[:, nf_real + ne_real:].T
    b1 = np.zeros((1, N1), np.float32)
    b1[0, :360] = np.asarray(params["b1"], np.float32)

    # FC2: each softmax group gets its own 128-lane stripe; pad bias = -1e30
    W2 = np.asarray(params["W2"], np.float32)                  # (lift*A, 360)
    b2v = np.asarray(params["b2"], np.float32)
    n_out = lift_num * 128
    w2 = np.zeros((N1, n_out), np.float32)
    b2 = np.full((1, n_out), -1e30, np.float32)
    for g in range(lift_num):
        w2[:360, g * 128:g * 128 + action_dim] = \
            W2[g * action_dim:(g + 1) * action_dim, :].T
        b2[0, g * 128:g * 128 + action_dim] = \
            b2v[g * action_dim:(g + 1) * action_dim]

    bf = jnp.bfloat16
    return dict(
        wf0=jnp.asarray(wf0, bf), bf0=jnp.asarray(bf0),
        wf1=jnp.asarray(wf1, bf), bf1=jnp.asarray(bf1),
        we0=jnp.asarray(we0, bf), be0=jnp.asarray(be0),
        we1=jnp.asarray(we1, bf), be1=jnp.asarray(be1),
        wp=jnp.asarray(wp, bf), bp=jnp.asarray(bp),
        w1=jnp.asarray(w1, bf), b1=jnp.asarray(b1),
        w2=jnp.asarray(w2, bf), b2=jnp.asarray(b2),
    )


# ----------------------------------------------------------------------------
# Wrapper: batch tiling + pallas_call (jit-able)
# ----------------------------------------------------------------------------
def actor_forward(floor, elv, elv_place, packed, action_dim, lift_num,
                  max_block_b=1024):
    B = floor.shape[0]

    # glue: channel-major flatten (same order as PyTorch .view), cast to bf16
    floor_flat = floor.reshape(B, -1).astype(jnp.bfloat16)
    elv_flat = elv.reshape(B, -1).astype(jnp.bfloat16)
    place = elv_place.astype(jnp.bfloat16)

    # ---- batch tiling: minimize padding waste, 16-sublane aligned (bf16),
    #      and keep >=2 grid steps when possible so both v7x TCs are used ----
    nsteps = max(-(-B // max_block_b), 1)
    if nsteps == 1 and B >= 32:
        nsteps = 2
    TB = _round_up(-(-B // nsteps), 16)
    grid = -(-B // TB)
    Bp = grid * TB
    if Bp != B:
        pad = ((0, Bp - B), (0, 0))
        floor_flat = jnp.pad(floor_flat, pad)
        elv_flat = jnp.pad(elv_flat, pad)
        place = jnp.pad(place, pad)

    weights = (packed["wf0"], packed["bf0"], packed["wf1"], packed["bf1"],
               packed["we0"], packed["be0"], packed["we1"], packed["be1"],
               packed["wp"], packed["bp"], packed["w1"], packed["b1"],
               packed["w2"], packed["b2"])

    def batched(a):
        return pl.BlockSpec((TB, a.shape[1]), lambda b: (b, 0))

    def resident(a):
        # constant block index -> weights stay VMEM-resident across the grid
        return pl.BlockSpec(a.shape, lambda b: (0, 0))

    n_out = lift_num * 128
    out_specs = pl.BlockSpec((TB, n_out), lambda b: (b, 0))

    # advisory cost estimate for XLA scheduling around the custom call
    mat_names = ("wf0", "wf1", "we0", "we1", "wp", "w1", "w2")
    flops = 2 * Bp * sum(int(np.prod(packed[n].shape)) for n in mat_names)
    bytes_accessed = int(
        (floor_flat.size + elv_flat.size + place.size) * 2
        + Bp * n_out * 4
        + sum(int(np.prod(v.shape)) * v.dtype.itemsize for v in weights))
    cost = pl.CostEstimate(flops=int(flops),
                           transcendentals=int(Bp * (n_out + lift_num)),
                           bytes_accessed=bytes_accessed)

    kernel = functools.partial(_actor_kernel, lift_num=lift_num)
    out = pl.pallas_call(
        kernel,
        out_shape=jax.ShapeDtypeStruct((Bp, n_out), jnp.float32),
        grid_spec=pltpu.PrefetchScalarGridSpec(
            num_scalar_prefetch=0,
            grid=(grid,),
            in_specs=[batched(floor_flat), batched(elv_flat), batched(place)]
                     + [resident(w) for w in weights],
            out_specs=out_specs,
        ),
        compiler_params=pltpu.CompilerParams(
            dimension_semantics=("parallel",)),
        cost_estimate=cost,
    )(floor_flat, elv_flat, place, *weights)

    return out[:B].reshape(B, lift_num, 128)[:, :, :action_dim]


# ----------------------------------------------------------------------------
# Parameters & pure-JAX reference
# ----------------------------------------------------------------------------
def make_params(key, building_height, mpf, mpe, action_dim, lift_num):
    Lf = building_height * mpf
    Le = mpe
    D = 32 * (Lf // 4) + 16 * (Le // 4) + 16
    ks = jax.random.split(key, 14)

    def u(k, shape, fan_in):
        bound = 1.0 / math.sqrt(fan_in)
        return jax.random.uniform(k, shape, jnp.float32, -bound, bound)

    return dict(
        Wf0=u(ks[0], (32, 2, 3), 2 * 3), bf0=u(ks[1], (32,), 2 * 3),
        Wf1=u(ks[2], (32, 32, 3), 32 * 3), bf1=u(ks[3], (32,), 32 * 3),
        We0=u(ks[4], (16, lift_num, 3), lift_num * 3), be0=u(ks[5], (16,), lift_num * 3),
        We1=u(ks[6], (16, 16, 3), 16 * 3), be1=u(ks[7], (16,), 16 * 3),
        Wp=u(ks[8], (16, lift_num), lift_num), bp=u(ks[9], (16,), lift_num),
        W1=u(ks[10], (360, D), D), b1=u(ks[11], (360,), D),
        W2=u(ks[12], (action_dim * lift_num, 360), 360),
        b2=u(ks[13], (action_dim * lift_num,), 360),
    )


def actor_forward_ref(floor, elv, elv_place, params, action_dim, lift_num):
    """Pure-JAX reference mirroring the PyTorch forward exactly."""
    def conv1d(x, w, b):
        L = x.shape[2]
        xp = jnp.pad(x, ((0, 0), (0, 0), (1, 1)))
        out = jnp.broadcast_to(b[None, :, None], (x.shape[0], w.shape[0], L))
        for k in range(3):
            out = out + jnp.einsum("bcl,oc->bol", xp[:, :, k:k + L], w[:, :, k])
        return out

    def maxpool(x):
        B, C, L = x.shape
        return jnp.max(x.reshape(B, C, L // 2, 2), axis=-1)

    relu = lambda v: jnp.maximum(v, 0.0)
    B = floor.shape[0]
    f = maxpool(relu(conv1d(floor, params["Wf0"], params["bf0"])))
    f = maxpool(relu(conv1d(f, params["Wf1"], params["bf1"])))
    e = maxpool(relu(conv1d(elv, params["We0"], params["be0"])))
    e = maxpool(relu(conv1d(e, params["We1"], params["be1"])))
    p = relu(elv_place @ params["Wp"].T + params["bp"])
    x = jnp.concatenate([f.reshape(B, -1), e.reshape(B, -1), p], axis=-1)
    x = x @ params["W1"].T + params["b1"]
    x = relu(x) @ params["W2"].T + params["b2"]
    x = x.reshape(B, lift_num, action_dim)
    return jax.nn.softmax(x, axis=-1)


if __name__ == "__main__":
    building_height, max_people_in_floor = 4, 4
    max_people_in_elevator = 8
    action_dim, lift_num = 4, 2
    batch = 2
    Lf = building_height * max_people_in_floor   # 16
    Le = max_people_in_elevator                  # 8

    key = jax.random.PRNGKey(0)
    kf, ke, kp, kw = jax.random.split(key, 4)
    floor = jax.random.uniform(kf, (batch, 2, Lf), jnp.float32)
    elv = jax.random.uniform(ke, (batch, lift_num, Le), jnp.float32)
    elv_place = jax.random.uniform(kp, (batch, lift_num), jnp.float32)

    params = make_params(kw, building_height, max_people_in_floor,
                         max_people_in_elevator, action_dim, lift_num)

    # one-time repacking (hoisted out of the forward call)
    packed = pack_actor_params(params, building_height, max_people_in_floor,
                               max_people_in_elevator, action_dim, lift_num)

    fwd = jax.jit(functools.partial(actor_forward, action_dim=action_dim,
                                    lift_num=lift_num))
    out = fwd(floor, elv, elv_place, packed)
    out = jax.block_until_ready(out)

    ref = actor_forward_ref(floor, elv, elv_place, params, action_dim, lift_num)
    # bf16 MXU operands with f32 accumulation -> relaxed tolerance on the
    # output probabilities; structural errors would be O(0.1).
    np.testing.assert_allclose(np.asarray(out), np.asarray(ref), rtol=2e-2, atol=2e-2)
    assert out.shape == (batch, lift_num, action_dim)
    print("KERNEL_OK")
</pallas_src>

<mosaic_0001>
module attributes {stable_mosaic.version = 11 : i64} {
  func.func @_actor_kernel(%arg0: i32, %arg1: memref<16x32xbf16, #tpu.memory_space<vmem>>, %arg2: memref<16x16xbf16, #tpu.memory_space<vmem>>, %arg3: memref<16x2xbf16, #tpu.memory_space<vmem>>, %arg4: memref<32x512xbf16, #tpu.memory_space<vmem>>, %arg5: memref<1x512xf32, #tpu.memory_space<vmem>>, %arg6: memref<256x256xbf16, #tpu.memory_space<vmem>>, %arg7: memref<1x256xf32, #tpu.memory_space<vmem>>, %arg8: memref<16x256xbf16, #tpu.memory_space<vmem>>, %arg9: memref<1x256xf32, #tpu.memory_space<vmem>>, %arg10: memref<128x256xbf16, #tpu.memory_space<vmem>>, %arg11: memref<1x256xf32, #tpu.memory_space<vmem>>, %arg12: memref<2x128xbf16, #tpu.memory_space<vmem>>, %arg13: memref<1x128xf32, #tpu.memory_space<vmem>>, %arg14: memref<384x384xbf16, #tpu.memory_space<vmem>>, %arg15: memref<1x384xf32, #tpu.memory_space<vmem>>, %arg16: memref<384x256xbf16, #tpu.memory_space<vmem>>, %arg17: memref<1x256xf32, #tpu.memory_space<vmem>>, %arg18: memref<16x256xf32, #tpu.memory_space<vmem>>) attributes {dimension_semantics = [#tpu.dimension_semantics<parallel>], iteration_bounds = array<i64: 1>, scalar_prefetch = 0 : i64, scratch_operands = 0 : i64, tpu.core_type = #tpu.core_type<tc>, window_params = [{transform_indices = @transform_0, window_bounds = array<i64: 16, 32>}, {transform_indices = @transform_1, window_bounds = array<i64: 16, 16>}, {transform_indices = @transform_2, window_bounds = array<i64: 16, 2>}, {pipeline_mode = #tpu.pipeline_mode<synchronous>, transform_indices = @transform_3, window_bounds = array<i64: 32, 512>}, {pipeline_mode = #tpu.pipeline_mode<synchronous>, transform_indices = @transform_4, window_bounds = array<i64: 1, 512>}, {pipeline_mode = #tpu.pipeline_mode<synchronous>, transform_indices = @transform_5, window_bounds = array<i64: 256, 256>}, {pipeline_mode = #tpu.pipeline_mode<synchronous>, transform_indices = @transform_6, window_bounds = array<i64: 1, 256>}, {pipeline_mode = #tpu.pipeline_mode<synchronous>, transform_indices = @transform_7, window_bounds = array<i64: 16, 256>}, {pipeline_mode = #tpu.pipeline_mode<synchronous>, transform_indices = @transform_8, window_bounds = array<i64: 1, 256>}, {pipeline_mode = #tpu.pipeline_mode<synchronous>, transform_indices = @transform_9, window_bounds = array<i64: 128, 256>}, {pipeline_mode = #tpu.pipeline_mode<synchronous>, transform_indices = @transform_10, window_bounds = array<i64: 1, 256>}, {pipeline_mode = #tpu.pipeline_mode<synchronous>, transform_indices = @transform_11, window_bounds = array<i64: 2, 128>}, {pipeline_mode = #tpu.pipeline_mode<synchronous>, transform_indices = @transform_12, window_bounds = array<i64: 1, 128>}, {pipeline_mode = #tpu.pipeline_mode<synchronous>, transform_indices = @transform_13, window_bounds = array<i64: 384, 384>}, {pipeline_mode = #tpu.pipeline_mode<synchronous>, transform_indices = @transform_14, window_bounds = array<i64: 1, 384>}, {pipeline_mode = #tpu.pipeline_mode<synchronous>, transform_indices = @transform_15, window_bounds = array<i64: 384, 256>}, {pipeline_mode = #tpu.pipeline_mode<synchronous>, transform_indices = @transform_16, window_bounds = array<i64: 1, 256>}, {transform_indices = @transform_17, window_bounds = array<i64: 16, 256>}]} {
    %c0 = arith.constant 0 : index
    %c0_0 = arith.constant 0 : index
    %0 = vector.load %arg1[%c0, %c0_0] : memref<16x32xbf16, #tpu.memory_space<vmem>>, vector<16x32xbf16>
    %c0_1 = arith.constant 0 : index
    %c0_2 = arith.constant 0 : index
    %1 = vector.load %arg4[%c0_1, %c0_2] : memref<32x512xbf16, #tpu.memory_space<vmem>>, vector<32x512xbf16>
    %cst = arith.constant dense<0.000000e+00> : vector<16x512xf32>
    %2 = tpu.matmul %0, %1, %cst {dimension_numbers = #tpu.dot_dimension_numbers<[1], [0], [0], [1], [0, 0, 1, 1], [], []>} : vector<16x32xbf16>, vector<32x512xbf16>, vector<16x512xf32> -> vector<16x512xf32>
    %c0_3 = arith.constant 0 : index
    %c0_4 = arith.constant 0 : index
    %3 = vector.load %arg5[%c0_3, %c0_4] : memref<1x512xf32, #tpu.memory_space<vmem>>, vector<1x512xf32>
    %4 = vector.broadcast %3 : vector<1x512xf32> to vector<16x512xf32>
    %5 = arith.addf %2, %4 : vector<16x512xf32>
    %cst_5 = arith.constant 0.000000e+00 : f32
    %6 = vector.broadcast %cst_5 : f32 to vector<16x512xf32>
    %7 = arith.maximumf %5, %6 : vector<16x512xf32>
    %8 = vector.extract_strided_slice %7 {offsets = [0, 0], sizes = [16, 256], strides = [1, 1]} : vector<16x512xf32> to vector<16x256xf32>
    %9 = vector.extract_strided_slice %7 {offsets = [0, 256], sizes = [16, 256], strides = [1, 1]} : vector<16x512xf32> to vector<16x256xf32>
    %10 = arith.maximumf %8, %9 : vector<16x256xf32>
    %11 = arith.truncf %10 : vector<16x256xf32> to vector<16x256xbf16>
    %c0_6 = arith.constant 0 : index
    %c0_7 = arith.constant 0 : index
    %12 = vector.load %arg6[%c0_6, %c0_7] : memref<256x256xbf16, #tpu.memory_space<vmem>>, vector<256x256xbf16>
    %cst_8 = arith.constant dense<0.000000e+00> : vector<16x256xf32>
    %13 = tpu.matmul %11, %12, %cst_8 {dimension_numbers = #tpu.dot_dimension_numbers<[1], [0], [0], [1], [0, 0, 1, 1], [], []>} : vector<16x256xbf16>, vector<256x256xbf16>, vector<16x256xf32> -> vector<16x256xf32>
    %c0_9 = arith.constant 0 : index
    %c0_10 = arith.constant 0 : index
    %14 = vector.load %arg7[%c0_9, %c0_10] : memref<1x256xf32, #tpu.memory_space<vmem>>, vector<1x256xf32>
    %15 = vector.broadcast %14 : vector<1x256xf32> to vector<16x256xf32>
    %16 = arith.addf %13, %15 : vector<16x256xf32>
    %cst_11 = arith.constant 0.000000e+00 : f32
    %17 = vector.broadcast %cst_11 : f32 to vector<16x256xf32>
    %18 = arith.maximumf %16, %17 : vector<16x256xf32>
    %19 = vector.extract_strided_slice %18 {offsets = [0, 0], sizes = [16, 128], strides = [1, 1]} : vector<16x256xf32> to vector<16x128xf32>
    %20 = vector.extract_strided_slice %18 {offsets = [0, 128], sizes = [16, 128], strides = [1, 1]} : vector<16x256xf32> to vector<16x128xf32>
    %21 = arith.maximumf %19, %20 : vector<16x128xf32>
    %c0_12 = arith.constant 0 : index
    %c0_13 = arith.constant 0 : index
    %22 = vector.load %arg2[%c0_12, %c0_13] : memref<16x16xbf16, #tpu.memory_space<vmem>>, vector<16x16xbf16>
    %c0_14 = arith.constant 0 : index
    %c0_15 = arith.constant 0 : index
    %23 = vector.load %arg8[%c0_14, %c0_15] : memref<16x256xbf16, #tpu.memory_space<vmem>>, vector<16x256xbf16>
    %cst_16 = arith.constant dense<0.000000e+00> : vector<16x256xf32>
    %24 = tpu.matmul %22, %23, %cst_16 {dimension_numbers = #tpu.dot_dimension_numbers<[1], [0], [0], [1], [0, 0, 1, 1], [], []>} : vector<16x16xbf16>, vector<16x256xbf16>, vector<16x256xf32> -> vector<16x256xf32>
    %c0_17 = arith.constant 0 : index
    %c0_18 = arith.constant 0 : index
    %25 = vector.load %arg9[%c0_17, %c0_18] : memref<1x256xf32, #tpu.memory_space<vmem>>, vector<1x256xf32>
    %26 = vector.broadcast %25 : vector<1x256xf32> to vector<16x256xf32>
    %27 = arith.addf %24, %26 : vector<16x256xf32>
    %cst_19 = arith.constant 0.000000e+00 : f32
    %28 = vector.broadcast %cst_19 : f32 to vector<16x256xf32>
    %29 = arith.maximumf %27, %28 : vector<16x256xf32>
    %30 = vector.extract_strided_slice %29 {offsets = [0, 0], sizes = [16, 128], strides = [1, 1]} : vector<16x256xf32> to vector<16x128xf32>
    %31 = vector.extract_strided_slice %29 {offsets = [0, 128], sizes = [16, 128], strides = [1, 1]} : vector<16x256xf32> to vector<16x128xf32>
    %32 = arith.maximumf %30, %31 : vector<16x128xf32>
    %33 = arith.truncf %32 : vector<16x128xf32> to vector<16x128xbf16>
    %c0_20 = arith.constant 0 : index
    %c0_21 = arith.constant 0 : index
    %34 = vector.load %arg10[%c0_20, %c0_21] : memref<128x256xbf16, #tpu.memory_space<vmem>>, vector<128x256xbf16>
    %cst_22 = arith.constant dense<0.000000e+00> : vector<16x256xf32>
    %35 = tpu.matmul %33, %34, %cst_22 {dimension_numbers = #tpu.dot_dimension_numbers<[1], [0], [0], [1], [0, 0, 1, 1], [], []>} : vector<16x128xbf16>, vector<128x256xbf16>, vector<16x256xf32> -> vector<16x256xf32>
    %c0_23 = arith.constant 0 : index
    %c0_24 = arith.constant 0 : index
    %36 = vector.load %arg11[%c0_23, %c0_24] : memref<1x256xf32, #tpu.memory_space<vmem>>, vector<1x256xf32>
    %37 = vector.broadcast %36 : vector<1x256xf32> to vector<16x256xf32>
    %38 = arith.addf %35, %37 : vector<16x256xf32>
    %cst_25 = arith.constant 0.000000e+00 : f32
    %39 = vector.broadcast %cst_25 : f32 to vector<16x256xf32>
    %40 = arith.maximumf %38, %39 : vector<16x256xf32>
    %41 = vector.extract_strided_slice %40 {offsets = [0, 0], sizes = [16, 128], strides = [1, 1]} : vector<16x256xf32> to vector<16x128xf32>
    %42 = vector.extract_strided_slice %40 {offsets = [0, 128], sizes = [16, 128], strides = [1, 1]} : vector<16x256xf32> to vector<16x128xf32>
    %43 = arith.maximumf %41, %42 : vector<16x128xf32>
    %c0_26 = arith.constant 0 : index
    %c0_27 = arith.constant 0 : index
    %44 = vector.load %arg3[%c0_26, %c0_27] : memref<16x2xbf16, #tpu.memory_space<vmem>>, vector<16x2xbf16>
    %c0_28 = arith.constant 0 : index
    %c0_29 = arith.constant 0 : index
    %45 = vector.load %arg12[%c0_28, %c0_29] : memref<2x128xbf16, #tpu.memory_space<vmem>>, vector<2x128xbf16>
    %cst_30 = arith.constant dense<0.000000e+00> : vector<16x128xf32>
    %46 = tpu.matmul %44, %45, %cst_30 {dimension_numbers = #tpu.dot_dimension_numbers<[1], [0], [0], [1], [0, 0, 1, 1], [], []>} : vector<16x2xbf16>, vector<2x128xbf16>, vector<16x128xf32> -> vector<16x128xf32>
    %c0_31 = arith.constant 0 : index
    %c0_32 = arith.constant 0 : index
    %47 = vector.load %arg13[%c0_31, %c0_32] : memref<1x128xf32, #tpu.memory_space<vmem>>, vector<1x128xf32>
    %48 = vector.broadcast %47 : vector<1x128xf32> to vector<16x128xf32>
    %49 = arith.addf %46, %48 : vector<16x128xf32>
    %cst_33 = arith.constant 0.000000e+00 : f32
    %50 = vector.broadcast %cst_33 : f32 to vector<16x128xf32>
    %51 = arith.maximumf %49, %50 : vector<16x128xf32>
    %52 = tpu.concatenate %21, %43, %51 in 1 : vector<16x128xf32>, vector<16x128xf32>, vector<16x128xf32> -> vector<16x384xf32>
    %53 = arith.truncf %52 : vector<16x384xf32> to vector<16x384xbf16>
    %c0_34 = arith.constant 0 : index
    %c0_35 = arith.constant 0 : index
    %54 = vector.load %arg14[%c0_34, %c0_35] : memref<384x384xbf16, #tpu.memory_space<vmem>>, vector<384x384xbf16>
    %cst_36 = arith.constant dense<0.000000e+00> : vector<16x384xf32>
    %55 = tpu.matmul %53, %54, %cst_36 {dimension_numbers = #tpu.dot_dimension_numbers<[1], [0], [0], [1], [0, 0, 1, 1], [], []>} : vector<16x384xbf16>, vector<384x384xbf16>, vector<16x384xf32> -> vector<16x384xf32>
    %c0_37 = arith.constant 0 : index
    %c0_38 = arith.constant 0 : index
    %56 = vector.load %arg15[%c0_37, %c0_38] : memref<1x384xf32, #tpu.memory_space<vmem>>, vector<1x384xf32>
    %57 = vector.broadcast %56 : vector<1x384xf32> to vector<16x384xf32>
    %58 = arith.addf %55, %57 : vector<16x384xf32>
    %cst_39 = arith.constant 0.000000e+00 : f32
    %59 = vector.broadcast %cst_39 : f32 to vector<16x384xf32>
    %60 = arith.maximumf %58, %59 : vector<16x384xf32>
    %61 = arith.truncf %60 : vector<16x384xf32> to vector<16x384xbf16>
    %c0_40 = arith.constant 0 : index
    %c0_41 = arith.constant 0 : index
    %62 = vector.load %arg16[%c0_40, %c0_41] : memref<384x256xbf16, #tpu.memory_space<vmem>>, vector<384x256xbf16>
    %cst_42 = arith.constant dense<0.000000e+00> : vector<16x256xf32>
    %63 = tpu.matmul %61, %62, %cst_42 {dimension_numbers = #tpu.dot_dimension_numbers<[1], [0], [0], [1], [0, 0, 1, 1], [], []>} : vector<16x384xbf16>, vector<384x256xbf16>, vector<16x256xf32> -> vector<16x256xf32>
    %c0_43 = arith.constant 0 : index
    %c0_44 = arith.constant 0 : index
    %64 = vector.load %arg17[%c0_43, %c0_44] : memref<1x256xf32, #tpu.memory_space<vmem>>, vector<1x256xf32>
    %65 = vector.broadcast %64 : vector<1x256xf32> to vector<16x256xf32>
    %66 = arith.addf %63, %65 : vector<16x256xf32>
    %67 = vector.extract_strided_slice %66 {offsets = [0, 0], sizes = [16, 128], strides = [1, 1]} : vector<16x256xf32> to vector<16x128xf32>
    %cst_45 = arith.constant dense<0xFF800000> : vector<16xf32>
    %68 = vector.multi_reduction <maximumf>, %67, %cst_45 [1] : vector<16x128xf32> to vector<16xf32>
    %69 = vector.shape_cast %68 : vector<16xf32> to vector<16x1xf32>
    %70 = vector.broadcast %69 : vector<16x1xf32> to vector<16x128xf32>
    %71 = arith.subf %67, %70 : vector<16x128xf32>
    %72 = math.exp %71 : vector<16x128xf32>
    %cst_46 = arith.constant dense<0.000000e+00> : vector<16xf32>
    %73 = vector.multi_reduction <add>, %72, %cst_46 [1] : vector<16x128xf32> to vector<16xf32>
    %74 = vector.shape_cast %73 : vector<16xf32> to vector<16x1xf32>
    %75 = tpu.reciprocal %74 : vector<16x1xf32> -> vector<16x1xf32>
    %76 = vector.broadcast %75 : vector<16x1xf32> to vector<16x128xf32>
    %77 = arith.mulf %72, %76 : vector<16x128xf32>
    %78 = vector.extract_strided_slice %66 {offsets = [0, 128], sizes = [16, 128], strides = [1, 1]} : vector<16x256xf32> to vector<16x128xf32>
    %cst_47 = arith.constant dense<0xFF800000> : vector<16xf32>
    %79 = vector.multi_reduction <maximumf>, %78, %cst_47 [1] : vector<16x128xf32> to vector<16xf32>
    %80 = vector.shape_cast %79 : vector<16xf32> to vector<16x1xf32>
    %81 = vector.broadcast %80 : vector<16x1xf32> to vector<16x128xf32>
    %82 = arith.subf %78, %81 : vector<16x128xf32>
    %83 = math.exp %82 : vector<16x128xf32>
    %cst_48 = arith.constant dense<0.000000e+00> : vector<16xf32>
    %84 = vector.multi_reduction <add>, %83, %cst_48 [1] : vector<16x128xf32> to vector<16xf32>
    %85 = vector.shape_cast %84 : vector<16xf32> to vector<16x1xf32>
    %86 = tpu.reciprocal %85 : vector<16x1xf32> -> vector<16x1xf32>
    %87 = vector.broadcast %86 : vector<16x1xf32> to vector<16x128xf32>
    %88 = arith.mulf %83, %87 : vector<16x128xf32>
    %89 = tpu.concatenate %77, %88 in 1 : vector<16x128xf32>, vector<16x128xf32> -> vector<16x256xf32>
    %c0_49 = arith.constant 0 : index
    %c0_50 = arith.constant 0 : index
    %90 = vector.load %arg18[%c0_49, %c0_50] : memref<16x256xf32, #tpu.memory_space<vmem>>, vector<16x256xf32>
    tpu.vector_store %arg18[%c0_49, %c0_50], %89 {strides = array<i32>} : memref<16x256xf32, #tpu.memory_space<vmem>>, vector<16x256xf32>,
    return
  }
  func.func @transform_0(%arg0: i32) -> (i32, i32) {
    %c0_i32 = arith.constant 0 : i32
    %c0_i32_0 = arith.constant 0 : i32
    return %arg0, %c0_i32 : i32, i32
  }
  func.func @transform_1(%arg0: i32) -> (i32, i32) {
    %c0_i32 = arith.constant 0 : i32
    %c0_i32_0 = arith.constant 0 : i32
    return %arg0, %c0_i32 : i32, i32
  }
  func.func @transform_2(%arg0: i32) -> (i32, i32) {
    %c0_i32 = arith.constant 0 : i32
    %c0_i32_0 = arith.constant 0 : i32
    return %arg0, %c0_i32 : i32, i32
  }
  func.func @transform_3(%arg0: i32) -> (i32, i32) {
    %c0_i32 = arith.constant 0 : i32
    %c0_i32_0 = arith.constant 0 : i32
    %c0_i32_1 = arith.constant 0 : i32
    return %c0_i32, %c0_i32_0 : i32, i32
  }
  func.func @transform_4(%arg0: i32) -> (i32, i32) {
    %c0_i32 = arith.constant 0 : i32
    %c0_i32_0 = arith.constant 0 : i32
    %c0_i32_1 = arith.constant 0 : i32
    return %c0_i32, %c0_i32_0 : i32, i32
  }
  func.func @transform_5(%arg0: i32) -> (i32, i32) {
    %c0_i32 = arith.constant 0 : i32
    %c0_i32_0 = arith.constant 0 : i32
    %c0_i32_1 = arith.constant 0 : i32
    return %c0_i32, %c0_i32_0 : i32, i32
  }
  func.func @transform_6(%arg0: i32) -> (i32, i32) {
    %c0_i32 = arith.constant 0 : i32
    %c0_i32_0 = arith.constant 0 : i32
    %c0_i32_1 = arith.constant 0 : i32
    return %c0_i32, %c0_i32_0 : i32, i32
  }
  func.func @transform_7(%arg0: i32) -> (i32, i32) {
    %c0_i32 = arith.constant 0 : i32
    %c0_i32_0 = arith.constant 0 : i32
    %c0_i32_1 = arith.constant 0 : i32
    return %c0_i32, %c0_i32_0 : i32, i32
  }
  func.func @transform_8(%arg0: i32) -> (i32, i32) {
    %c0_i32 = arith.constant 0 : i32
    %c0_i32_0 = arith.constant 0 : i32
    %c0_i32_1 = arith.constant 0 : i32
    return %c0_i32, %c0_i32_0 : i32, i32
  }
  func.func @transform_9(%arg0: i32) -> (i32, i32) {
    %c0_i32 = arith.constant 0 : i32
    %c0_i32_0 = arith.constant 0 : i32
    %c0_i32_1 = arith.constant 0 : i32
    return %c0_i32, %c0_i32_0 : i32, i32
  }
  func.func @transform_10(%arg0: i32) -> (i32, i32) {
    %c0_i32 = arith.constant 0 : i32
    %c0_i32_0 = arith.constant 0 : i32
    %c0_i32_1 = arith.constant 0 : i32
    return %c0_i32, %c0_i32_0 : i32, i32
  }
  func.func @transform_11(%arg0: i32) -> (i32, i32) {
    %c0_i32 = arith.constant 0 : i32
    %c0_i32_0 = arith.constant 0 : i32
    %c0_i32_1 = arith.constant 0 : i32
    return %c0_i32, %c0_i32_0 : i32, i32
  }
  func.func @transform_12(%arg0: i32) -> (i32, i32) {
    %c0_i32 = arith.constant 0 : i32
    %c0_i32_0 = arith.constant 0 : i32
    %c0_i32_1 = arith.constant 0 : i32
    return %c0_i32, %c0_i32_0 : i32, i32
  }
  func.func @transform_13(%arg0: i32) -> (i32, i32) {
    %c0_i32 = arith.constant 0 : i32
    %c0_i32_0 = arith.constant 0 : i32
    %c0_i32_1 = arith.constant 0 : i32
    return %c0_i32, %c0_i32_0 : i32, i32
  }
  func.func @transform_14(%arg0: i32) -> (i32, i32) {
    %c0_i32 = arith.constant 0 : i32
    %c0_i32_0 = arith.constant 0 : i32
    %c0_i32_1 = arith.constant 0 : i32
    return %c0_i32, %c0_i32_0 : i32, i32
  }
  func.func @transform_15(%arg0: i32) -> (i32, i32) {
    %c0_i32 = arith.constant 0 : i32
    %c0_i32_0 = arith.constant 0 : i32
    %c0_i32_1 = arith.constant 0 : i32
    return %c0_i32, %c0_i32_0 : i32, i32
  }
  func.func @transform_16(%arg0: i32) -> (i32, i32) {
    %c0_i32 = arith.constant 0 : i32
    %c0_i32_0 = arith.constant 0 : i32
    %c0_i32_1 = arith.constant 0 : i32
    return %c0_i32, %c0_i32_0 : i32, i32
  }
  func.func @transform_17(%arg0: i32) -> (i32, i32) {
    %c0_i32 = arith.constant 0 : i32
    %c0_i32_0 = arith.constant 0 : i32
    return %arg0, %c0_i32 : i32, i32
  }
}

</mosaic_0001>

<bundles_post_ra>
// kernel: actor_forward.1
= control target key start
LH: loop header
LB: loop body
LE: loop exit
PB: predicated region body
PF: predicated region fallthrough
CT: control target
= control target key end

     0   :  { %s2897_s0 = inlined_call_operand.vmem [shape: bf16[16,32], index: 0, kind: input, shape index: {}]   ;;  %s2898_s1 = inlined_call_operand.vmem [shape: bf16[16,16], index: 1, kind: input, shape index: {}]   ;;  %s2899_s2 = inlined_call_operand.vmem [shape: bf16[16,2], index: 2, kind: input, shape index: {}]   ;;  %s2900_s3 = inlined_call_operand.vmem [shape: bf16[32,512], index: 3, kind: input, shape index: {}]   ;;  %s2901_s4 = inlined_call_operand.vmem [shape: f32[1,512], index: 4, kind: input, shape index: {}]   ;;  %s2902_s5 = inlined_call_operand.hbm [shape: bf16[256,256], index: 5, kind: input, shape index: {}]   ;;  %s2903_s6 = inlined_call_operand.vmem [shape: f32[1,256], index: 6, kind: input, shape index: {}]   ;;  %s2904_s7 = inlined_call_operand.vmem [shape: bf16[16,256], index: 7, kind: input, shape index: {}]   ;;  %s2905_s8 = inlined_call_operand.vmem [shape: f32[1,256], index: 8, kind: input, shape index: {}]   ;;  %s2906_s9 = inlined_call_operand.hbm [shape: bf16[128,256], index: 9, kind: input, shape index: {}]   ;;  %s2907_s10 = inlined_call_operand.vmem [shape: f32[1,256], index: 10, kind: input, shape index: {}]   ;;  %s2908_s11 = inlined_call_operand.vmem [shape: bf16[2,128], index: 11, kind: input, shape index: {}]   ;;  %s2909_s12 = inlined_call_operand.vmem [shape: f32[1,128], index: 12, kind: input, shape index: {}]   ;;  %s2910_s13 = inlined_call_operand.hbm [shape: bf16[384,384], index: 13, kind: input, shape index: {}]   ;;  %s2911_s14 = inlined_call_operand.vmem [shape: f32[1,384], index: 14, kind: input, shape index: {}]   ;;  %s2912_s15 = inlined_call_operand.hbm [shape: bf16[384,256], index: 15, kind: input, shape index: {}]   ;;  %s2913_s16 = inlined_call_operand.vmem [shape: f32[1,256], index: 16, kind: input, shape index: {}]   ;;  %s2914_s17 = inlined_call_operand.vmem [shape: f32[16,256], index: 17, kind: output, shape index: {}]  }
   0x1   :  { %2915 = sst [smem:[#allocation12_spill]] %s2897_s0 }
   0x2   :  { %2916 = sst [smem:[#allocation13_spill]] %s2898_s1 }
   0x3   :  { %22 = vsyncpa [#allocation3], 0 }
   0x4   :  { %23 = vsyncpa [#allocation5], 0 }
   0x5   :  { %24 = vsyncpa [#allocation8], 0  ;;  %s2604_s24 = smov [#allocation4]   ;;  %s2605_s26 = smov [#allocation2]  }
   0x6   :  { %s58_s25 = sshll.u32 %s2604_s24, 4  ;;  %s40_s27 = sshll.u32 %s2605_s26, 4  ;;  %s59_s25 = int_to_ptr.vmem [resolvable:$true] %s58_s25  ;;  %s2705_s27 = int_to_ptr.vmem [resolvable:$true] %s40_s27 }
   0x7   :  { %s2510_s0 = scalar_lea.hbm %s2906_s9, 2048 }
   0x8   :  { %p2511_p0 = scmp.ne.s32.totalorder %s2906_s9, %s2510_s0  ;;  %p2514_p1 = scmp.lt.u32.totalorder %s2510_s0, %s2906_s9 }
   0xa   :  { %p2516_p2 = pnand %p2514_p1, %p2511_p0 }
   0xc   :  { %2519 = shalt.err (!%p2516_p2)
}
   0xd   :  { %s2520_s20 = scalar_lea.vmem %s59_s25, 2048  ;;  %p2525_p4 = scmp.lt.s32.totalorder %s59_s25, %s59_s25 }
   0xe   :  { %p2521_p3 = scmp.ne.s32.totalorder %s59_s25, %s2520_s20  ;;  %p2526_p5 = scmp.lt.s32.totalorder %s2520_s20, %s2520_s20 }
  0x10   :  { %p2527_p6 = por %p2526_p5, %p2525_p4 }
  0x12   :  { %p2528_p7 = pnand %p2527_p6, %p2521_p3 }
  0x14   :  { %2531 = shalt.err (!%p2528_p7)
}
  0x15   :  { %s2606_s21 = smov 128   ;;  %s2607_s22 = smov 8  }
  0x16   :  { %64 = dma.hbm_to_vmem [thread:$0]  %s2906_s9, 2048, %s59_s25, [#allocation5], %s2606_s21, %s2606_s21, %s2607_s22  }
  0x17   :  { %s2532_s29 = scalar_lea.hbm %s2902_s5, 4096 }
  0x18   :  { %p2533_p8 = scmp.ne.s32.totalorder %s2902_s5, %s2532_s29  ;;  %p2536_p9 = scmp.lt.u32.totalorder %s2532_s29, %s2902_s5 }
  0x1a   :  { %p2538_p10 = pnand %p2536_p9, %p2533_p8 }
  0x1c   :  { %2541 = shalt.err (!%p2538_p10)
}
  0x1d   :  { %s2542_s1 = scalar_lea.vmem %s2705_s27, 4096  ;;  %p2547_p12 = scmp.lt.s32.totalorder %s2705_s27, %s2705_s27 }
  0x1e   :  { %p2543_p11 = scmp.ne.s32.totalorder %s2705_s27, %s2542_s1  ;;  %p2548_p13 = scmp.lt.s32.totalorder %s2542_s1, %s2542_s1 }
  0x20   :  { %p2549_p0 = por %p2548_p13, %p2547_p12 }
  0x22   :  { %p2550_p1 = pnand %p2549_p0, %p2543_p11 }
  0x24   :  { %2553 = shalt.err (!%p2550_p1)
}
  0x25   :  { %46 = dma.hbm_to_vmem [thread:$0]  %s2902_s5, 4096, %s2705_s27, [#allocation3], %s2606_s21, %s2606_s21, %s2607_s22  }
  0x26   :  { %s2608_s20 = smov [#allocation6]   ;;  %s2554_s28 = scalar_lea.hbm %s2910_s13, 9216 }
  0x27   :  { %s76_s23 = sshll.u32 %s2608_s20, 4  ;;  %p2555_p2 = scmp.ne.s32.totalorder %s2910_s13, %s2554_s28  ;;  %s77_s23 = int_to_ptr.vmem [resolvable:$true] %s76_s23 }
  0x28   :  { %p2558_p3 = scmp.lt.u32.totalorder %s2554_s28, %s2910_s13 }
  0x2a   :  { %p2560_p4 = pnand %p2558_p3, %p2555_p2 }
  0x2c   :  { %2563 = shalt.err (!%p2560_p4)
}
  0x2d   :  { %s2564_s19 = scalar_lea.vmem %s77_s23, 9216  ;;  %p2569_p6 = scmp.lt.s32.totalorder %s77_s23, %s77_s23 }
  0x2e   :  { %p2565_p5 = scmp.ne.s32.totalorder %s77_s23, %s2564_s19  ;;  %p2570_p7 = scmp.lt.s32.totalorder %s2564_s19, %s2564_s19 }
  0x30   :  { %p2571_p8 = por %p2570_p7, %p2569_p6 }
  0x32   :  { %p2572_p9 = pnand %p2571_p8, %p2565_p5 }
  0x34   :  { %2575 = shalt.err (!%p2572_p9)
}
  0x35   :  { %s2609_s5 = smov 192   ;;  %s2610_s27 = smov 12  }
  0x36   :  { %82 = dma.hbm_to_vmem [thread:$0]  %s2910_s13, 9216, %s77_s23, [#allocation5], %s2609_s5, %s2609_s5, %s2610_s27  }
  0x37   :  { %s2611_s25 = smov [#allocation7]   ;;  %s2576_s28 = scalar_lea.hbm %s2912_s15, 6144 }
  0x38   :  { %s90_s20 = sshll.u32 %s2611_s25, 4  ;;  %p2577_p10 = scmp.ne.s32.totalorder %s2912_s15, %s2576_s28  ;;  %s91_s20 = int_to_ptr.vmem [resolvable:$true] %s90_s20 }
  0x39   :  { %p2580_p11 = scmp.lt.u32.totalorder %s2576_s28, %s2912_s15 }
  0x3b   :  { %p2582_p12 = pnand %p2580_p11, %p2577_p10 }
  0x3d   :  { %2585 = shalt.err (!%p2582_p12)
}
  0x3e   :  { %s2586_s19 = scalar_lea.vmem %s91_s20, 6144  ;;  %p2591_p0 = scmp.lt.s32.totalorder %s91_s20, %s91_s20 }
  0x3f   :  { %p2587_p13 = scmp.ne.s32.totalorder %s91_s20, %s2586_s19  ;;  %p2592_p1 = scmp.lt.s32.totalorder %s2586_s19, %s2586_s19 }
  0x41   :  { %p2593_p2 = por %p2592_p1, %p2591_p0 }
  0x43   :  { %p2594_p3 = pnand %p2593_p2, %p2587_p13 }
  0x45   :  { %2597 = shalt.err (!%p2594_p3)
}
  0x46   :  { %96 = dma.hbm_to_vmem [thread:$0]  %s2912_s15, 6144, %s91_s20, [#allocation8], %s2606_s21, %s2606_s21, %s2607_s22  }
  0x47   :  { %2598 = dma.done.wait [#allocation3], 4096  }
  0x48   :  { %2599 = vsyncadd [#allocation3], 4294963200 }
  0x49   :  { %2600 = dma.done.wait [#allocation5], 11264  }
  0x4a   :  { %2601 = vsyncadd [#allocation5], 4294956032 }
  0x4b   :  { %2602 = dma.done.wait [#allocation8], 6144  }
  0x4c   :  { %2603 = vsyncadd [#allocation8], 4294961152  ;;  %v2612_v0 = vmov 0   ;;  %v2236_v1 = vld [vmem:[%s2900_s3 + $0x4] ss:$16 sps:$4 sm:$0xff]   ;;  %s2917_s29 = sld [smem:[#allocation12_spill]]  ;;  %v124_v62 = vlaneseq }
  0x4d   :  { %225 = vmatprep.mubr.bf16.mxu1 %v2612_v0  ;;  %v2238_v2 = vld [vmem:[%s2900_s3] ss:$16 sps:$4 sm:$0xff]   ;;  %193 = vmatprep.subr.bf16.mxu1 %v2236_v1  ;;  %v2239_v3 = vld [vmem:[%s2900_s3 + $0x24] ss:$16 sps:$4 sm:$0xff]   ;;  %v2245_v5 = vld [vmem:[%s2900_s3 + $0xc] ss:$16 sps:$4 sm:$0xff]  }
  0x4e   :  { %194 = vmatpush1.bf16.msra.mxu1 %v2238_v2  ;;  %v2241_v4 = vld [vmem:[%s2900_s3 + $0x20] ss:$16 sps:$4 sm:$0xff]   ;;  %vm189_vm0 = vcmask 261120   ;;  %v2243_v7 = vld [vmem:[%s2900_s3 + $0x8] ss:$16 sps:$4 sm:$0xff]   ;;  %s2918_s15 = sld [smem:[#allocation13_spill]] }
  0x4f   :  { %195 = vmatprep.subr.bf16.mxu1 %v2239_v3  ;;  %v2248_v8 = vld [vmem:[%s2900_s3 + $0x2c] ss:$16 sps:$4 sm:$0xff]   ;;  %v2255_v10 = vld [vmem:[#allocation2] ss:$8 sps:$4 sm:$0xff]   ;;  %v2258_v14 = vld [vmem:[#allocation2 + $0x10] ss:$8 sps:$4 sm:$0xff]  }
  0x50   :  { %v2253_v9 = vld [vmem:[#allocation2 + $0x4] ss:$8 sps:$4 sm:$0xff]   ;;  %v2256_v11 = vld [vmem:[#allocation2 + $0x14] ss:$8 sps:$4 sm:$0xff]   ;;  %v2246_v12 = vld [vmem:[%s2900_s3 + $0x28] ss:$16 sps:$4 sm:$0xff]  }
  0x51   :  { %v2251_v13 = vld [vmem:[%s2904_s7 + $0x4] ss:$8 sps:$4 sm:$0xff]   ;;  %497 = vmatprep.subr.bf16.mxu0 %v2253_v9  ;;  %v2249_v16 = vld [vmem:[%s2904_s7] ss:$8 sps:$4 sm:$0xff]   ;;  %v2262_v18 = vld [vmem:[#allocation2 + $0x34] ss:$8 sps:$4 sm:$0xff]  }
  0x52   :  { %v2242_v6 = vld [vmem:[%s2917_s29] sm:$0xff]   ;;  %196 = vmatpush1.bf16.msra.mxu1 %v2241_v4  ;;  %498 = vmatpush1.bf16.msra.mxu0 %v2255_v10  ;;  %v2264_v20 = vld [vmem:[#allocation2 + $0x30] ss:$8 sps:$4 sm:$0xff]   ;;  %vm577_vm1 = vcmask 130048   ;;  %v2268_v25 = vld [vmem:[#allocation2 + $0x54] ss:$8 sps:$4 sm:$0xff]  }
  0x53   :  { %236 = vmatprep.subr.bf16.mxu1 %v2245_v5  ;;  %499 = vmatprep.subr.bf16.mxu0 %v2256_v11  ;;  %v2259_v15 = vld [vmem:[#allocation2 + $0x24] ss:$8 sps:$4 sm:$0xff]   ;;  %v2261_v17 = vld [vmem:[#allocation2 + $0x20] ss:$8 sps:$4 sm:$0xff]   ;;  %v2270_v26 = vld [vmem:[#allocation2 + $0x50] ss:$8 sps:$4 sm:$0xff]  }
  0x54   :  { %v2252_v19 = vld [vmem:[%s2918_s15] sm:$0xff]   ;;  %v2274_v29 = vld [vmem:[#allocation2 + $0x74] ss:$8 sps:$4 sm:$0xff]   ;;  %v2276_v30 = vld [vmem:[#allocation2 + $0x70] ss:$8 sps:$4 sm:$0xff]   ;;  %v2613_v61 = vmov 0.0  }
  0x55   :  { %1973 = vmatmul.mubr.msk.bf16.vlgmr.msra.gmra.mrb[0].mxu1 %vm189_vm0, %v2242_v6  ;;  %v2265_v21 = vld [vmem:[#allocation2 + $0x44] ss:$8 sps:$4 sm:$0xff]   ;;  %v2283_v22 = vld [vmem:[#allocation4] ss:$8 sps:$4 sm:$0xff]   ;;  %v2280_v33 = vld [vmem:[#allocation2 + $0x94] ss:$8 sps:$4 sm:$0xff]  }
  0x56   :  { %237 = vmatpush1.bf16.msra.mxu1 %v2243_v7  ;;  %268 = vmatprep.mubr.bf16.mxu1 %v2612_v0  ;;  %v2285_v23 = vld [vmem:[#allocation4 + $0x4] ss:$8 sps:$4 sm:$0xff]   ;;  %v2267_v24 = vld [vmem:[#allocation2 + $0x40] ss:$8 sps:$4 sm:$0xff]   ;;  %v2282_v34 = vld [vmem:[#allocation2 + $0x90] ss:$8 sps:$4 sm:$0xff]  }
  0x57   :  { %238 = vmatprep.subr.bf16.mxu1 %v2248_v8  ;;  %500 = vmatpush1.bf16.msra.mxu0 %v2258_v14  ;;  %v2271_v27 = vld [vmem:[#allocation2 + $0x64] ss:$8 sps:$4 sm:$0xff]   ;;  %v2273_v28 = vld [vmem:[#allocation2 + $0x60] ss:$8 sps:$4 sm:$0xff]   ;;  %v2291_v37 = vld [vmem:[#allocation4 + $0x14] ss:$8 sps:$4 sm:$0xff]  }
  0x58   :  { %501 = vmatprep.subr.bf16.mxu0 %v2259_v15  ;;  %v2277_v31 = vld [vmem:[#allocation2 + $0x84] ss:$8 sps:$4 sm:$0xff]   ;;  %v2279_v32 = vld [vmem:[#allocation2 + $0x80] ss:$8 sps:$4 sm:$0xff]   ;;  %v2289_v38 = vld [vmem:[#allocation4 + $0x10] ss:$8 sps:$4 sm:$0xff]  }
  0x59   :  { %v2286_v35 = vld [vmem:[#allocation2 + $0xa4] ss:$8 sps:$4 sm:$0xff]   ;;  %v2288_v36 = vld [vmem:[#allocation2 + $0xa0] ss:$8 sps:$4 sm:$0xff]   ;;  %v2292_v39 = vld [vmem:[#allocation2 + $0xb4] ss:$8 sps:$4 sm:$0xff]  }
  0x5a   :  { %239 = vmatpush1.bf16.msra.mxu1 %v2246_v12  ;;  %v2294_v40 = vld [vmem:[#allocation2 + $0xb0] ss:$8 sps:$4 sm:$0xff]   ;;  %v2297_v41 = vld [vmem:[#allocation4 + $0x24] ss:$8 sps:$4 sm:$0xff]   ;;  %v2295_v42 = vld [vmem:[#allocation4 + $0x20] ss:$8 sps:$4 sm:$0xff]  }
  0x5b   :  { %581 = vmatprep.subr.bf16.mxu1 %v2251_v13  ;;  %502 = vmatpush1.bf16.msra.mxu0 %v2261_v17  ;;  %v2298_v43 = vld [vmem:[#allocation2 + $0xc4] ss:$8 sps:$4 sm:$0xff]   ;;  %v2300_v44 = vld [vmem:[#allocation2 + $0xc0] ss:$8 sps:$4 sm:$0xff]   ;;  %v2303_v45 = vld [vmem:[#allocation4 + $0x34] ss:$8 sps:$4 sm:$0xff]  }
  0x5c   :  { %503 = vmatprep.subr.bf16.mxu0 %v2262_v18  ;;  %v2301_v46 = vld [vmem:[#allocation4 + $0x30] ss:$8 sps:$4 sm:$0xff]   ;;  %v2304_v47 = vld [vmem:[#allocation2 + $0xd4] ss:$8 sps:$4 sm:$0xff]   ;;  %v2309_v49 = vld [vmem:[#allocation4 + $0x44] ss:$8 sps:$4 sm:$0xff]  }
  0x5d   :  { %1974 = vmatmul.mubr.msk.bf16.vlgmr.msra.gmra.mrb[4].mxu1 %vm189_vm0, %v2242_v6  ;;  %v2306_v48 = vld [vmem:[#allocation2 + $0xd0] ss:$8 sps:$4 sm:$0xff]   ;;  %v2307_v50 = vld [vmem:[#allocation4 + $0x40] ss:$8 sps:$4 sm:$0xff]   ;;  %v2310_v51 = vld [vmem:[#allocation2 + $0xe4] ss:$8 sps:$4 sm:$0xff]  }
  0x5e   :  { %582 = vmatpush1.bf16.msra.mxu1 %v2249_v16  ;;  %613 = vmatprep.mubr.bf16.mxu1 %v2612_v0  ;;  %v2312_v52 = vld [vmem:[#allocation2 + $0xe0] ss:$8 sps:$4 sm:$0xff]   ;;  %v2315_v53 = vld [vmem:[#allocation4 + $0x54] ss:$8 sps:$4 sm:$0xff]   ;;  %v2313_v54 = vld [vmem:[#allocation4 + $0x50] ss:$8 sps:$4 sm:$0xff]  }
  0x5f   :  { %504 = vmatpush1.bf16.msra.mxu0 %v2264_v20  ;;  %739 = vmatprep.subr.bf16.mxu1 %v2285_v23  ;;  %v2316_v55 = vld [vmem:[#allocation2 + $0xf4] ss:$8 sps:$4 sm:$0xff]   ;;  %v2318_v56 = vld [vmem:[#allocation2 + $0xf0] ss:$8 sps:$4 sm:$0xff]   ;;  %v2321_v57 = vld [vmem:[#allocation4 + $0x64] ss:$8 sps:$4 sm:$0xff]  }
  0x60   :  { %505 = vmatprep.subr.bf16.mxu0 %v2265_v21  ;;  %v2319_v58 = vld [vmem:[#allocation4 + $0x60] ss:$8 sps:$4 sm:$0xff]   ;;  %v2324_v59 = vld [vmem:[#allocation4 + $0x74] ss:$8 sps:$4 sm:$0xff]   ;;  %v2322_v60 = vld [vmem:[#allocation4 + $0x70] ss:$8 sps:$4 sm:$0xff]  }
  0x61   :  { %v2813_v63 = vshrl.u32 %v124_v62, 7  ;;  %v122_v2 = vld [vmem:[%s2901_s4] sm:$0xf]  ;;  %vm2614_vm2 = vmmov 0   ;;  %vm807_vm3 = vcmask 1040384   ;;  %vm803_vm4 = vcmask 15360  }
  0x62   :  { %v550_v23 = vld [vmem:[%s2905_s8] sm:$0x3] }
  0x63   :  { %506 = vmatpush1.bf16.msra.mxu0 %v2267_v24  ;;  %v2816_v1 = vsub.s32 0, %v2813_v63  ;;  %v2822_v4 = vsub.s32 1, %v2813_v63  ;;  %v134_v6 = vsub.s32 2, %v2813_v63  ;;  %v138_v8 = vsub.s32 3, %v2813_v63  ;;  %v2325_v62 = vld [vmem:[%s2899_s2] sm:$0xff]  }
  0x64   :  { %507 = vmatprep.subr.bf16.mxu0 %v2268_v25 }
  0x65   :  { %2010 = vmatmul.mubr.msk.bf16.vlgmr.msra.gmra.mrb[8].mxu1 %vm577_vm1, %v2252_v19  ;;  %v127_v9 = vrot.slane %v122_v2, %v2816_v1  ;;  %v131_v11 = vrot.slane %v122_v2, %v2822_v4  ;;  %v135_v12 = vrot.slane %v122_v2, %v134_v6  ;;  %v139_v13 = vrot.slane %v122_v2, %v138_v8  ;;  %v2326_v2 = vld [vmem:[#allocation6] ss:$12 sps:$4 sm:$0xff]   ;;  %v2332_v8 = vld [vmem:[#allocation6 + $0x30] ss:$12 sps:$4 sm:$0xff]  }
  0x66   :  { %740 = vmatpush1.bf16.msra.mxu1 %v2283_v22  ;;  %771 = vmatprep.mubr.bf16.mxu1 %v2612_v0 }
  0x67   :  { %508 = vmatpush1.bf16.msra.mxu0 %v2270_v26  ;;  %741 = vmatprep.subr.bf16.mxu1 %v2291_v37  ;;  %v559_v37 = vrot.slane %v550_v23, %v2822_v4 }
  0x68   :  { %509 = vmatprep.subr.bf16.mxu0 %v2271_v27 }
  0x6a   :  { %742 = vmatpush1.bf16.msra.mxu1 %v2289_v38 }
  0x6b   :  { %510 = vmatpush1.bf16.msra.mxu0 %v2273_v28  ;;  %743 = vmatprep.subr.bf16.mxu1 %v2297_v41 }
  0x6c   :  { %511 = vmatprep.subr.bf16.mxu0 %v2274_v29 }
  0x6e   :  { %744 = vmatpush1.bf16.msra.mxu1 %v2295_v42 }
  0x6f   :  { %512 = vmatpush1.bf16.msra.mxu0 %v2276_v30  ;;  %745 = vmatprep.subr.bf16.mxu1 %v2303_v45 }
  0x70   :  { %513 = vmatprep.subr.bf16.mxu0 %v2277_v31 }
  0x72   :  { %746 = vmatpush1.bf16.msra.mxu1 %v2301_v46 }
  0x73   :  { %514 = vmatpush1.bf16.msra.mxu0 %v2279_v32  ;;  %747 = vmatprep.subr.bf16.mxu1 %v2309_v49 }
  0x74   :  { %515 = vmatprep.subr.bf16.mxu0 %v2280_v33 }
  0x76   :  { %748 = vmatpush1.bf16.msra.mxu1 %v2307_v50 }
  0x77   :  { %516 = vmatpush1.bf16.msra.mxu0 %v2282_v34  ;;  %749 = vmatprep.subr.bf16.mxu1 %v2315_v53  ;;  %v555_v34 = vrot.slane %v550_v23, %v2816_v1  ;;  %v2358_v23 = vld [vmem:[#allocation6 + $0xf4] ss:$12 sps:$4 sm:$0xff]  }
  0x78   :  { %517 = vmatprep.subr.bf16.mxu0 %v2286_v35 }
  0x7a   :  { %750 = vmatpush1.bf16.msra.mxu1 %v2313_v54 }
  0x7b   :  { %518 = vmatpush1.bf16.msra.mxu0 %v2288_v36  ;;  %751 = vmatprep.subr.bf16.mxu1 %v2321_v57 }
  0x7c   :  { %519 = vmatprep.subr.bf16.mxu0 %v2292_v39 }
  0x7e   :  { %752 = vmatpush1.bf16.msra.mxu1 %v2319_v58 }
  0x7f   :  { %520 = vmatpush1.bf16.msra.mxu0 %v2294_v40  ;;  %753 = vmatprep.subr.bf16.mxu1 %v2324_v59 }
  0x80   :  { %521 = vmatprep.subr.bf16.mxu0 %v2298_v43 }
  0x82   :  { %754 = vmatpush1.bf16.msra.mxu1 %v2322_v60  ;;  %v2328_v60 = vld [vmem:[#allocation6 + $0x4] ss:$12 sps:$4 sm:$0xff]  }
  0x83   :  { %522 = vmatpush1.bf16.msra.mxu0 %v2300_v44  ;;  %2183 = vmatprep.subr.bf16.mxu1 %v2613_v61 }
  0x84   :  { %523 = vmatprep.subr.bf16.mxu0 %v2304_v47 }
  0x87   :  { %524 = vmatpush1.bf16.msra.mxu0 %v2306_v48 }
  0x88   :  { %525 = vmatprep.subr.bf16.mxu0 %v2310_v51 }
  0x8b   :  { %526 = vmatpush1.bf16.msra.mxu0 %v2312_v52 }
  0x8c   :  { %527 = vmatprep.subr.bf16.mxu0 %v2316_v55 }
  0x8f   :  { %528 = vmatpush1.bf16.msra.mxu0 %v2318_v56  ;;  %v790_v56 = vld [vmem:[%s2908_s11] sm:$0x1] }
  0x90   :  { %2189 = vmatprep.subr.bf16.mxu0 %v2613_v61  ;;  %v809_v59 = vsel %vm807_vm3, %v790_v56, 0 }
 0x128   :  { %v227_v3 = vpop.f32.mrb[0].mxu1 }
 0x129   :  { %v229_v5 = vpop.f32.mrb[1].mxu1  ;;  %v228_v14 = vadd.f32 %v227_v3, %v127_v9  ;;  %v2331_v3 = vld [vmem:[#allocation6 + $0x1c] ss:$12 sps:$4 sm:$0xff]  }
 0x12a   :  { %v231_v7 = vpop.f32.mrb[2].mxu1  ;;  %v230_v15 = vadd.f32 %v229_v5, %v131_v11  ;;  %v2329_v5 = vld [vmem:[#allocation6 + $0x18] ss:$12 sps:$4 sm:$0xff]  }
 0x12b   :  { %v233_v10 = vpop.f32.mrb[3].mxu1  ;;  %v232_v17 = vadd.f32 %v231_v7, %v127_v9  ;;  %v279_v24 = vmax.f32 %v228_v14, 0.0  ;;  %v2334_v7 = vld [vmem:[#allocation6 + $0x34] ss:$12 sps:$4 sm:$0xff]   ;;  %v2337_v9 = vld [vmem:[#allocation6 + $0x4c] ss:$12 sps:$4 sm:$0xff]  }
 0x12c   :  { %v234_v20 = vadd.f32 %v233_v10, %v131_v11  ;;  %v280_v28 = vmax.f32 %v230_v15, 0.0  ;;  %v2335_v10 = vld [vmem:[#allocation6 + $0x48] ss:$12 sps:$4 sm:$0xff]   ;;  %v2340_v11 = vld [vmem:[#allocation6 + $0x64] ss:$12 sps:$4 sm:$0xff]  }
 0x12d   :  { %v283_v31 = vmax.f32 %v232_v17, 0.0  ;;  %v2341_v14 = vld [vmem:[#allocation6 + $0x78] ss:$12 sps:$4 sm:$0xff]   ;;  %v2346_v15 = vld [vmem:[#allocation6 + $0x94] ss:$12 sps:$4 sm:$0xff]  }
 0x12e   :  { %v284_v35 = vmax.f32 %v234_v20, 0.0  ;;  %v2349_v17 = vld [vmem:[#allocation6 + $0xac] ss:$12 sps:$4 sm:$0xff]  }
 0x12f   :  { %v2350_v20 = vld [vmem:[#allocation6 + $0xc0] ss:$12 sps:$4 sm:$0xff]  }
 0x130   :  { %v270_v16 = vpop.f32.mrb[4].mxu1 }
 0x131   :  { %v271_v18 = vadd.f32 %v270_v16, %v135_v12  ;;  %v272_v19 = vpop.f32.mrb[5].mxu1  ;;  %v2344_v16 = vld [vmem:[#allocation6 + $0x90] ss:$12 sps:$4 sm:$0xff]  }
 0x132   :  { %v273_v21 = vadd.f32 %v272_v19, %v139_v13  ;;  %v274_v22 = vpop.f32.mrb[6].mxu1  ;;  %v2352_v19 = vld [vmem:[#allocation6 + $0xc4] ss:$12 sps:$4 sm:$0xff]  }
 0x133   :  { %v281_v25 = vmax.f32 %v271_v18, 0.0  ;;  %v275_v26 = vadd.f32 %v274_v22, %v135_v12  ;;  %v276_v27 = vpop.f32.mrb[7].mxu1  ;;  %v2338_v12 = vld [vmem:[#allocation6 + $0x60] ss:$12 sps:$4 sm:$0xff]   ;;  %v2347_v18 = vld [vmem:[#allocation6 + $0xa8] ss:$12 sps:$4 sm:$0xff]  }
 0x134   :  { %v282_v29 = vmax.f32 %v273_v21, 0.0  ;;  %v277_v30 = vadd.f32 %v276_v27, %v139_v13  ;;  %v2343_v13 = vld [vmem:[#allocation6 + $0x7c] ss:$12 sps:$4 sm:$0xff]   ;;  %v2353_v22 = vld [vmem:[#allocation6 + $0xd8] ss:$12 sps:$4 sm:$0xff]  }
 0x135   :  { %v287_v32 = vmax.f32 %v279_v24, %v281_v25  ;;  %v285_v33 = vmax.f32 %v275_v26, 0.0  ;;  %v2355_v21 = vld [vmem:[#allocation6 + $0xdc] ss:$12 sps:$4 sm:$0xff]   ;;  %v2361_v25 = vld [vmem:[#allocation6 + $0x10c] ss:$12 sps:$4 sm:$0xff]  }
 0x136   :  { %v286_v36 = vmax.f32 %v277_v30, 0.0  ;;  %v288_v38 = vmax.f32 %v280_v28, %v282_v29  ;;  %v2356_v24 = vld [vmem:[#allocation6 + $0xf0] ss:$12 sps:$4 sm:$0xff]   ;;  %v2359_v26 = vld [vmem:[#allocation6 + $0x108] ss:$12 sps:$4 sm:$0xff]  }
 0x137   :  { %v289_v39 = vmax.f32 %v283_v31, %v285_v33  ;;  %v2364_v27 = vld [vmem:[#allocation6 + $0x124] ss:$12 sps:$4 sm:$0xff]   ;;  %v2362_v28 = vld [vmem:[#allocation6 + $0x120] ss:$12 sps:$4 sm:$0xff]   ;;  %v2367_v29 = vld [vmem:[#allocation6 + $0x13c] ss:$12 sps:$4 sm:$0xff]  }
 0x138   :  { %v615_v40 = vpop.f32.mrb[8].mxu1  ;;  %v290_v41 = vmax.f32 %v284_v35, %v286_v36  ;;  %v2365_v30 = vld [vmem:[#allocation6 + $0x138] ss:$12 sps:$4 sm:$0xff]   ;;  %v2370_v31 = vld [vmem:[#allocation6 + $0x154] ss:$12 sps:$4 sm:$0xff]  }
 0x139   :  { %v616_v42 = vadd.f32 %v615_v40, %v555_v34  ;;  %v617_v43 = vpop.f32.mrb[9].mxu1  ;;  %v291_v44 = vpack.c.bf16 %v289_v39, %v287_v32  ;;  %v2368_v32 = vld [vmem:[#allocation6 + $0x150] ss:$12 sps:$4 sm:$0xff]   ;;  %v2373_v33 = vld [vmem:[#allocation6 + $0x16c] ss:$12 sps:$4 sm:$0xff]  }
 0x13a   :  { %v618_v45 = vadd.f32 %v617_v43, %v559_v37  ;;  %v619_v46 = vpop.f32.mrb[10].mxu1  ;;  %v292_v47 = vpack.c.bf16 %v290_v41, %v288_v38  ;;  %v2374_v35 = vld [vmem:[#allocation6 + $0x188] ss:$12 sps:$4 sm:$0xff]   ;;  %v2377_v36 = vld [vmem:[#allocation6 + $0x184] ss:$12 sps:$4 sm:$0xff]  }
 0x13b   :  { %v624_v48 = vmax.f32 %v616_v42, 0.0  ;;  %v620_v49 = vadd.f32 %v619_v46, %v555_v34  ;;  %v621_v50 = vpop.f32.mrb[11].mxu1  ;;  %v2371_v34 = vld [vmem:[#allocation6 + $0x168] ss:$12 sps:$4 sm:$0xff]   ;;  %v2382_v38 = vld [vmem:[#allocation6 + $0x1b8] ss:$12 sps:$4 sm:$0xff]  }
 0x13c   :  { %v625_v51 = vmax.f32 %v618_v45, 0.0  ;;  %v622_v52 = vadd.f32 %v621_v50, %v559_v37  ;;  %529 = vmatprep.mubr.bf16.mxu0 %v292_v47  ;;  %v2378_v37 = vld [vmem:[#allocation6 + $0x1a0] ss:$12 sps:$4 sm:$0xff]   ;;  %v2386_v39 = vld [vmem:[#allocation6 + $0x1d0] ss:$12 sps:$4 sm:$0xff]  }
 0x13d   :  { %v626_v53 = vmax.f32 %v620_v49, 0.0  ;;  %530 = vmatmul.mubr.bf16.vlgmr.msra.gmra.mrb[0].mxu0 %v291_v44  ;;  %v2390_v40 = vld [vmem:[#allocation6 + $0x1e8] ss:$12 sps:$4 sm:$0xff]   ;;  %v2394_v41 = vld [vmem:[#allocation6 + $0x200] ss:$12 sps:$4 sm:$0xff]  }
 0x13e   :  { %v628_v54 = vmax.f32 %v624_v48, %v625_v51  ;;  %v627_v55 = vmax.f32 %v622_v52, 0.0  ;;  %2205 = vmatprep.mubr.msk.bf16.mxu0 %vm2614_vm2, %v2613_v61  ;;  %2190 = vmatpush3.bf16.msra.mxu0 %v2374_v35  ;;  %v2398_v42 = vld [vmem:[#allocation6 + $0x218] ss:$12 sps:$4 sm:$0xff]   ;;  %v2402_v43 = vld [vmem:[#allocation6 + $0x230] ss:$12 sps:$4 sm:$0xff]  }
 0x13f   :  { %2191 = vmatprep.subr.bf16.mxu0 %v2613_v61  ;;  %v2424_v44 = vld [vmem:[#allocation7 + $0x4] ss:$8 sps:$4 sm:$0xff]   ;;  %v325_v45 = vld [vmem:[%s2903_s6] sm:$0x3] }
 0x140   :  { %v629_v57 = vmax.f32 %v626_v53, %v627_v55  ;;  %v330_v46 = vrot.slane %v325_v45, %v2816_v1  ;;  %v334_v47 = vrot.slane %v325_v45, %v2822_v4  ;;  %v647_v51 = vld [vmem:[%s2907_s10] sm:$0x3]  ;;  %v2433_v45 = vld [vmem:[#allocation7 + $0x34] ss:$8 sps:$4 sm:$0xff]  }
 0x141   :  { %v2385_v35 = vld [vmem:[#allocation6 + $0x1b4] ss:$12 sps:$4 sm:$0xff]  }
 0x142   :  { %v630_v58 = vpack.c.bf16 %v629_v57, %v628_v54  ;;  %2192 = vmatpush3.bf16.msra.mxu0 %v2378_v37  ;;  %v2427_v37 = vld [vmem:[#allocation7 + $0x14] ss:$8 sps:$4 sm:$0xff]  }
 0x143   :  { %2193 = vmatprep.subr.bf16.mxu0 %v2613_v61 }
 0x144   :  { %772 = vmatmul.mubr.bf16.vlgmr.msra.gmra.mrb[12].mxu1 %v630_v58  ;;  %v652_v58 = vrot.slane %v647_v51, %v2816_v1 }
 0x145   :  { %2184 = vmatpush3.bf16.msra.mxu1 %v809_v59  ;;  %2185 = vmatprep.mubr.msk.bf16.mxu1 %vm2614_vm2, %v2613_v61 }
 0x146   :  { %1354 = vmatprep.subr.bf16.mxu1 %v2328_v60  ;;  %2194 = vmatpush3.bf16.msra.mxu0 %v2382_v38  ;;  %v656_v60 = vrot.slane %v647_v51, %v2822_v4  ;;  %v2383_v38 = vld [vmem:[#allocation6 + $0x1b0] ss:$12 sps:$4 sm:$0xff]   ;;  %v2434_v51 = vld [vmem:[#allocation7 + $0x40] ss:$8 sps:$4 sm:$0xff]  }
 0x147   :  { %2195 = vmatprep.subr.bf16.mxu0 %v2613_v61 }
 0x14a   :  { %2196 = vmatpush3.bf16.msra.mxu0 %v2386_v39  ;;  %v2425_v39 = vld [vmem:[#allocation7 + $0x10] ss:$8 sps:$4 sm:$0xff]  }
 0x14b   :  { %2197 = vmatprep.subr.bf16.mxu0 %v2613_v61 }
 0x14c   :  { %2186 = vmatmul.mubr.msk.bf16.vlgmr.msra.gmra.mrb[16].mxu1 %vm803_vm4, %v2325_v62 }
 0x14d   :  { %1355 = vmatpush1.bf16.msra.mxu1 %v2326_v2 }
 0x14e   :  { %1356 = vmatprep.subr.bf16.mxu1 %v2331_v3  ;;  %2198 = vmatpush3.bf16.msra.mxu0 %v2390_v40  ;;  %v2389_v40 = vld [vmem:[#allocation6 + $0x1cc] ss:$12 sps:$4 sm:$0xff]  }
 0x14f   :  { %2199 = vmatprep.subr.bf16.mxu0 %v2613_v61 }
 0x151   :  { %1357 = vmatpush1.bf16.msra.mxu1 %v2329_v5 }
 0x152   :  { %1358 = vmatprep.subr.bf16.mxu1 %v2334_v7  ;;  %2200 = vmatpush3.bf16.msra.mxu0 %v2394_v41  ;;  %v2430_v41 = vld [vmem:[#allocation7 + $0x24] ss:$8 sps:$4 sm:$0xff]  }
 0x153   :  { %2201 = vmatprep.subr.bf16.mxu0 %v2613_v61 }
 0x155   :  { %1359 = vmatpush1.bf16.msra.mxu1 %v2332_v8 }
 0x156   :  { %1360 = vmatprep.subr.bf16.mxu1 %v2337_v9  ;;  %2202 = vmatpush3.bf16.msra.mxu0 %v2398_v42  ;;  %v2387_v42 = vld [vmem:[#allocation6 + $0x1c8] ss:$12 sps:$4 sm:$0xff]  }
 0x157   :  { %2203 = vmatprep.subr.bf16.mxu0 %v2613_v61 }
 0x159   :  { %1361 = vmatpush1.bf16.msra.mxu1 %v2335_v10 }
 0x15a   :  { %1362 = vmatprep.subr.bf16.mxu1 %v2340_v11  ;;  %2204 = vmatpush3.bf16.msra.mxu0 %v2402_v43  ;;  %v2428_v43 = vld [vmem:[#allocation7 + $0x20] ss:$8 sps:$4 sm:$0xff]  }
 0x15b   :  { %1831 = vmatprep.subr.bf16.mxu0 %v2424_v44  ;;  %v2393_v44 = vld [vmem:[#allocation6 + $0x1e4] ss:$12 sps:$4 sm:$0xff]  }
 0x15d   :  { %1363 = vmatpush1.bf16.msra.mxu1 %v2338_v12 }
 0x15e   :  { %1364 = vmatprep.subr.bf16.mxu1 %v2343_v13 }
 0x161   :  { %1365 = vmatpush1.bf16.msra.mxu1 %v2341_v14 }
 0x162   :  { %1366 = vmatprep.subr.bf16.mxu1 %v2346_v15 }
 0x165   :  { %1367 = vmatpush1.bf16.msra.mxu1 %v2344_v16 }
 0x166   :  { %1368 = vmatprep.subr.bf16.mxu1 %v2349_v17 }
 0x169   :  { %1369 = vmatpush1.bf16.msra.mxu1 %v2347_v18 }
 0x16a   :  { %1370 = vmatprep.subr.bf16.mxu1 %v2352_v19 }
 0x16d   :  { %1371 = vmatpush1.bf16.msra.mxu1 %v2350_v20  ;;  %v2027_v20 = vld [vmem:[%s2909_s12] ss:$0 sm:$0xff] }
 0x16e   :  { %1372 = vmatprep.subr.bf16.mxu1 %v2355_v21 }
 0x171   :  { %1373 = vmatpush1.bf16.msra.mxu1 %v2353_v22 }
 0x172   :  { %1374 = vmatprep.subr.bf16.mxu1 %v2358_v23 }
 0x175   :  { %1375 = vmatpush1.bf16.msra.mxu1 %v2356_v24 }
 0x176   :  { %1376 = vmatprep.subr.bf16.mxu1 %v2361_v25 }
 0x179   :  { %1377 = vmatpush1.bf16.msra.mxu1 %v2359_v26  ;;  %v2375_v26 = vld [vmem:[#allocation6 + $0x180] ss:$12 sps:$4 sm:$0xff]  }
 0x17a   :  { %1378 = vmatprep.subr.bf16.mxu1 %v2364_v27 }
 0x17d   :  { %1379 = vmatpush1.bf16.msra.mxu1 %v2362_v28  ;;  %v2381_v28 = vld [vmem:[#allocation6 + $0x19c] ss:$12 sps:$4 sm:$0xff]  }
 0x17e   :  { %1380 = vmatprep.subr.bf16.mxu1 %v2367_v29 }
 0x181   :  { %1381 = vmatpush1.bf16.msra.mxu1 %v2365_v30 }
 0x182   :  { %1382 = vmatprep.subr.bf16.mxu1 %v2370_v31 }
 0x185   :  { %1383 = vmatpush1.bf16.msra.mxu1 %v2368_v32 }
 0x186   :  { %1384 = vmatprep.subr.bf16.mxu1 %v2373_v33  ;;  %v2379_v33 = vld [vmem:[#allocation6 + $0x198] ss:$12 sps:$4 sm:$0xff]  }
 0x189   :  { %1385 = vmatpush1.bf16.msra.mxu1 %v2371_v34  ;;  %v2422_v34 = vld [vmem:[#allocation7] ss:$8 sps:$4 sm:$0xff]  }
 0x18a   :  { %1397 = vmatprep.subr.bf16.mxu1 %v2377_v36 }
 0x210   :  { %v531_v48 = vpop.f32.mrb[0].mxu0 }
 0x211   :  { %v532_v49 = vadd.f32 %v531_v48, %v330_v46  ;;  %v533_v50 = vpop.f32.mrb[1].mxu0  ;;  %v2397_v48 = vld [vmem:[#allocation6 + $0x1fc] ss:$12 sps:$4 sm:$0xff]  }
 0x212   :  { %v534_v61 = vadd.f32 %v533_v50, %v334_v47  ;;  %v535_v52 = vpop.f32.mrb[2].mxu0  ;;  %v2395_v50 = vld [vmem:[#allocation6 + $0x1f8] ss:$12 sps:$4 sm:$0xff]  }
 0x213   :  { %v540_v53 = vmax.f32 %v532_v49, 0.0  ;;  %v536_v54 = vadd.f32 %v535_v52, %v330_v46  ;;  %v537_v55 = vpop.f32.mrb[3].mxu0  ;;  %v2391_v46 = vld [vmem:[#allocation6 + $0x1e0] ss:$12 sps:$4 sm:$0xff]   ;;  %v2439_v52 = vld [vmem:[#allocation7 + $0x54] ss:$8 sps:$4 sm:$0xff]  }
 0x214   :  { %v541_v56 = vmax.f32 %v534_v61, 0.0  ;;  %v538_v57 = vadd.f32 %v537_v55, %v334_v47  ;;  %v2431_v47 = vld [vmem:[#allocation7 + $0x30] ss:$8 sps:$4 sm:$0xff]   ;;  %v2436_v49 = vld [vmem:[#allocation7 + $0x44] ss:$8 sps:$4 sm:$0xff]  }
 0x215   :  { %v542_v59 = vmax.f32 %v536_v54, 0.0  ;;  %v2401_v61 = vld [vmem:[#allocation6 + $0x214] ss:$12 sps:$4 sm:$0xff]   ;;  %v2437_v54 = vld [vmem:[#allocation7 + $0x50] ss:$8 sps:$4 sm:$0xff]  }
 0x216   :  { %v544_v62 = vmax.f32 %v540_v53, %v541_v56  ;;  %v543_v2 = vmax.f32 %v538_v57, 0.0  ;;  %v2399_v53 = vld [vmem:[#allocation6 + $0x210] ss:$12 sps:$4 sm:$0xff]   ;;  %v2405_v55 = vld [vmem:[#allocation6 + $0x22c] ss:$12 sps:$4 sm:$0xff]  }
 0x217   :  { %v773_v3 = vpop.f32.mrb[12].mxu1  ;;  %v2442_v56 = vld [vmem:[#allocation7 + $0x64] ss:$8 sps:$4 sm:$0xff]   ;;  %v2403_v57 = vld [vmem:[#allocation6 + $0x228] ss:$12 sps:$4 sm:$0xff]  }
 0x218   :  { %v545_v5 = vmax.f32 %v542_v59, %v543_v2  ;;  %v774_v7 = vadd.f32 %v773_v3, %v652_v58  ;;  %v775_v8 = vpop.f32.mrb[13].mxu1  ;;  %v2406_v59 = vld [vmem:[#allocation6 + $0xc8] ss:$12 sps:$4 sm:$0xff]   ;;  %v2408_v2 = vld [vmem:[#allocation6 + $0xe0] ss:$12 sps:$4 sm:$0xff]  }
 0x219   :  { %v776_v9 = vadd.f32 %v775_v8, %v656_v60  ;;  %v777_v10 = vpop.f32.mrb[14].mxu1  ;;  %v2443_v3 = vld [vmem:[#allocation7 + $0x70] ss:$8 sps:$4 sm:$0xff]  }
 0x21a   :  { %v2860_v11 = vpack.c.bf16 %v545_v5, %v544_v62  ;;  %v782_v12 = vmax.f32 %v774_v7, 0.0  ;;  %v778_v13 = vadd.f32 %v777_v10, %v652_v58  ;;  %v779_v14 = vpop.f32.mrb[15].mxu1  ;;  %v2440_v58 = vld [vmem:[#allocation7 + $0x60] ss:$8 sps:$4 sm:$0xff]   ;;  %v2448_v5 = vld [vmem:[#allocation7 + $0x84] ss:$8 sps:$4 sm:$0xff]  }
 0x21b   :  { %v783_v15 = vmax.f32 %v776_v9, 0.0  ;;  %v780_v16 = vadd.f32 %v779_v14, %v656_v60  ;;  %v2445_v60 = vld [vmem:[#allocation7 + $0x74] ss:$8 sps:$4 sm:$0xff]   ;;  %v2409_v7 = vld [vmem:[#allocation6 + $0x20] ss:$12 sps:$4 sm:$0xff]  }
 0x21c   :  { %v784_v17 = vmax.f32 %v778_v13, 0.0  ;;  %v2407_v62 = vld [vmem:[#allocation6 + $0x8] ss:$12 sps:$4 sm:$0xff]   ;;  %v2410_v8 = vld [vmem:[#allocation6 + $0xf8] ss:$12 sps:$4 sm:$0xff]  }
 0x21d   :  { %v786_v18 = vmax.f32 %v782_v12, %v783_v15  ;;  %v785_v19 = vmax.f32 %v780_v16, 0.0  ;;  %v2446_v9 = vld [vmem:[#allocation7 + $0x80] ss:$8 sps:$4 sm:$0xff]   ;;  %v2451_v10 = vld [vmem:[#allocation7 + $0x94] ss:$8 sps:$4 sm:$0xff]  }
 0x21e   :  { %v2411_v12 = vld [vmem:[#allocation6 + $0x38] ss:$12 sps:$4 sm:$0xff]   ;;  %v2412_v13 = vld [vmem:[#allocation6 + $0x110] ss:$12 sps:$4 sm:$0xff]  }
 0x21f   :  { %v787_v21 = vmax.f32 %v784_v17, %v785_v19  ;;  %v845_v22 = vpop.f32.mrb[16].mxu1  ;;  %v2449_v14 = vld [vmem:[#allocation7 + $0x90] ss:$8 sps:$4 sm:$0xff]   ;;  %v2454_v15 = vld [vmem:[#allocation7 + $0xa4] ss:$8 sps:$4 sm:$0xff]  }
 0x220   :  { %v846_v23 = vadd.f32 %v2027_v20, %v845_v22  ;;  %v2187_v24 = vpop.f32.mrb[17].mxu1  ;;  %v2413_v16 = vld [vmem:[#allocation6 + $0x50] ss:$12 sps:$4 sm:$0xff]   ;;  %v2414_v17 = vld [vmem:[#allocation6 + $0x128] ss:$12 sps:$4 sm:$0xff]  }
 0x221   :  { %v2865_v25 = vpack.c.bf16 %v787_v21, %v786_v18  ;;  %v848_v27 = vpop.f32.mrb[18].mxu1  ;;  %v2452_v18 = vld [vmem:[#allocation7 + $0xa0] ss:$8 sps:$4 sm:$0xff]   ;;  %v2457_v19 = vld [vmem:[#allocation7 + $0xb4] ss:$8 sps:$4 sm:$0xff]  }
 0x222   :  { %v852_v29 = vmax.f32 %v846_v23, 0.0  ;;  %v849_v30 = vadd.f32 %v2027_v20, %v848_v27  ;;  %v2188_v31 = vpop.f32.mrb[19].mxu1  ;;  %v2415_v20 = vld [vmem:[#allocation6 + $0x68] ss:$12 sps:$4 sm:$0xff]   ;;  %v2416_v21 = vld [vmem:[#allocation6 + $0x140] ss:$12 sps:$4 sm:$0xff]  }
 0x223   :  { %1386 = vmatprep.mubr.bf16.mxu1 %v2865_v25  ;;  %v2455_v22 = vld [vmem:[#allocation7 + $0xb0] ss:$8 sps:$4 sm:$0xff]   ;;  %v2460_v23 = vld [vmem:[#allocation7 + $0xc4] ss:$8 sps:$4 sm:$0xff]   ;;  %v2463_v31 = vld [vmem:[#allocation7 + $0xd4] ss:$8 sps:$4 sm:$0xff]  }
 0x224   :  { %1387 = vmatmul.mubr.bf16.vlgmr.msra.gmra.mrb[20].mxu1 %v2860_v11  ;;  %v853_v32 = vmax.f32 %v849_v30, 0.0  ;;  %v2417_v24 = vld [vmem:[#allocation6 + $0x80] ss:$12 sps:$4 sm:$0xff]   ;;  %v2419_v27 = vld [vmem:[#allocation6 + $0x98] ss:$12 sps:$4 sm:$0xff]  }
 0x225   :  { %1398 = vmatpush1.bf16.msra.mxu1 %v2375_v26  ;;  %1429 = vmatprep.mubr.bf16.mxu1 %v2612_v0  ;;  %v2458_v26 = vld [vmem:[#allocation7 + $0xc0] ss:$8 sps:$4 sm:$0xff]   ;;  %v2461_v30 = vld [vmem:[#allocation7 + $0xd0] ss:$8 sps:$4 sm:$0xff]  }
 0x226   :  { %1399 = vmatprep.subr.bf16.mxu1 %v2381_v28  ;;  %v856_v36 = vpack.c.bf16 %v853_v32, %v852_v29  ;;  %v2420_v28 = vld [vmem:[#allocation6 + $0x170] ss:$12 sps:$4 sm:$0xff]   ;;  %v2466_v32 = vld [vmem:[#allocation7 + $0xe4] ss:$8 sps:$4 sm:$0xff]  }
 0x227   :  { %v2421_v29 = vld [vmem:[#allocation6 + $0xb0] ss:$12 sps:$4 sm:$0xff]  }
 0x228   :  { %2206 = vmatmul.mubr.bf16.vlgmr.msra.gmra.mrb[4].mxu0 %v856_v36 }
 0x229   :  { %1400 = vmatpush1.bf16.msra.mxu1 %v2379_v33  ;;  %1832 = vmatpush1.bf16.msra.mxu0 %v2422_v34  ;;  %v2464_v33 = vld [vmem:[#allocation7 + $0xe0] ss:$8 sps:$4 sm:$0xff]   ;;  %v2469_v34 = vld [vmem:[#allocation7 + $0xf4] ss:$8 sps:$4 sm:$0xff]  }
 0x22a   :  { %1401 = vmatprep.subr.bf16.mxu1 %v2385_v35  ;;  %1833 = vmatprep.subr.bf16.mxu0 %v2427_v37  ;;  %v2467_v35 = vld [vmem:[#allocation7 + $0xf0] ss:$8 sps:$4 sm:$0xff]  }
 0x22d   :  { %1402 = vmatpush1.bf16.msra.mxu1 %v2383_v38  ;;  %1834 = vmatpush1.bf16.msra.mxu0 %v2425_v39 }
 0x22e   :  { %1403 = vmatprep.subr.bf16.mxu1 %v2389_v40  ;;  %1835 = vmatprep.subr.bf16.mxu0 %v2430_v41 }
 0x231   :  { %1404 = vmatpush1.bf16.msra.mxu1 %v2387_v42  ;;  %1836 = vmatpush1.bf16.msra.mxu0 %v2428_v43 }
 0x232   :  { %1405 = vmatprep.subr.bf16.mxu1 %v2393_v44  ;;  %1837 = vmatprep.subr.bf16.mxu0 %v2433_v45 }
 0x235   :  { %1406 = vmatpush1.bf16.msra.mxu1 %v2391_v46  ;;  %1838 = vmatpush1.bf16.msra.mxu0 %v2431_v47 }
 0x236   :  { %1407 = vmatprep.subr.bf16.mxu1 %v2397_v48  ;;  %1839 = vmatprep.subr.bf16.mxu0 %v2436_v49 }
 0x239   :  { %1408 = vmatpush1.bf16.msra.mxu1 %v2395_v50  ;;  %1840 = vmatpush1.bf16.msra.mxu0 %v2434_v51 }
 0x23a   :  { %1409 = vmatprep.subr.bf16.mxu1 %v2401_v61  ;;  %1841 = vmatprep.subr.bf16.mxu0 %v2439_v52 }
 0x23d   :  { %1410 = vmatpush1.bf16.msra.mxu1 %v2399_v53  ;;  %1842 = vmatpush1.bf16.msra.mxu0 %v2437_v54 }
 0x23e   :  { %1411 = vmatprep.subr.bf16.mxu1 %v2405_v55  ;;  %1843 = vmatprep.subr.bf16.mxu0 %v2442_v56  ;;  %v2470_v56 = vld [vmem:[#allocation7 + $0x100] ss:$8 sps:$4 sm:$0xff]  }
 0x241   :  { %1412 = vmatpush1.bf16.msra.mxu1 %v2403_v57  ;;  %1844 = vmatpush1.bf16.msra.mxu0 %v2440_v58  ;;  %v2475_v57 = vld [vmem:[#allocation7 + $0x114] ss:$8 sps:$4 sm:$0xff]   ;;  %v2473_v58 = vld [vmem:[#allocation7 + $0x110] ss:$8 sps:$4 sm:$0xff]  }
 0x242   :  { %2152 = vmatprep.subr.bf16.mxu1 %v2406_v59  ;;  %1845 = vmatprep.subr.bf16.mxu0 %v2445_v60  ;;  %v2478_v59 = vld [vmem:[#allocation7 + $0x124] ss:$8 sps:$4 sm:$0xff]   ;;  %v2476_v60 = vld [vmem:[#allocation7 + $0x120] ss:$8 sps:$4 sm:$0xff]  }
 0x244   :  { %1430 = vmatmul.mubr.bf16.vlgmr.msra.gmra.mrb[20].mxu1 %v856_v36  ;;  %v2472_v36 = vld [vmem:[#allocation7 + $0x104] ss:$8 sps:$4 sm:$0xff]  }
 0x245   :  { %2153 = vmatpush3.bf16.msra.mxu1 %v2407_v62  ;;  %1472 = vmatprep.mubr.bf16.mxu1 %v2865_v25  ;;  %v2418_v25 = vld [vmem:[#allocation6 + $0x158] ss:$12 sps:$4 sm:$0xff]   ;;  %v2481_v62 = vld [vmem:[#allocation7 + $0x134] ss:$8 sps:$4 sm:$0xff]  }
 0x246   :  { %2154 = vmatprep.subr.bf16.mxu1 %v2408_v2  ;;  %1846 = vmatpush1.bf16.msra.mxu0 %v2443_v3  ;;  %v2479_v2 = vld [vmem:[#allocation7 + $0x130] ss:$8 sps:$4 sm:$0xff]   ;;  %v2484_v3 = vld [vmem:[#allocation7 + $0x144] ss:$8 sps:$4 sm:$0xff]  }
 0x247   :  { %1847 = vmatprep.subr.bf16.mxu0 %v2448_v5  ;;  %v2482_v5 = vld [vmem:[#allocation7 + $0x140] ss:$8 sps:$4 sm:$0xff]  }
 0x249   :  { %2155 = vmatpush3.bf16.msra.mxu1 %v2409_v7  ;;  %v2487_v7 = vld [vmem:[#allocation7 + $0x154] ss:$8 sps:$4 sm:$0xff]  }
 0x24a   :  { %2156 = vmatprep.subr.bf16.mxu1 %v2410_v8  ;;  %1848 = vmatpush1.bf16.msra.mxu0 %v2446_v9  ;;  %v2485_v8 = vld [vmem:[#allocation7 + $0x150] ss:$8 sps:$4 sm:$0xff]   ;;  %v2490_v9 = vld [vmem:[#allocation7 + $0x164] ss:$8 sps:$4 sm:$0xff]  }
 0x24b   :  { %1849 = vmatprep.subr.bf16.mxu0 %v2451_v10 }
 0x24d   :  { %2157 = vmatpush3.bf16.msra.mxu1 %v2411_v12  ;;  %v2488_v12 = vld [vmem:[#allocation7 + $0x160] ss:$8 sps:$4 sm:$0xff]  }
 0x24e   :  { %2158 = vmatprep.subr.bf16.mxu1 %v2412_v13  ;;  %1850 = vmatpush1.bf16.msra.mxu0 %v2449_v14  ;;  %v2493_v14 = vld [vmem:[#allocation7 + $0x174] ss:$8 sps:$4 sm:$0xff]  }
 0x24f   :  { %1851 = vmatprep.subr.bf16.mxu0 %v2454_v15 }
 0x251   :  { %2159 = vmatpush3.bf16.msra.mxu1 %v2413_v16 }
 0x252   :  { %2160 = vmatprep.subr.bf16.mxu1 %v2414_v17  ;;  %1852 = vmatpush1.bf16.msra.mxu0 %v2452_v18 }
 0x253   :  { %1853 = vmatprep.subr.bf16.mxu0 %v2457_v19 }
 0x255   :  { %2161 = vmatpush3.bf16.msra.mxu1 %v2415_v20  ;;  %v2491_v20 = vld [vmem:[#allocation7 + $0x170] ss:$8 sps:$4 sm:$0xff]  }
 0x256   :  { %2162 = vmatprep.subr.bf16.mxu1 %v2416_v21  ;;  %1854 = vmatpush1.bf16.msra.mxu0 %v2455_v22 }
 0x257   :  { %1855 = vmatprep.subr.bf16.mxu0 %v2460_v23 }
 0x259   :  { %2163 = vmatpush3.bf16.msra.mxu1 %v2417_v24 }
 0x25a   :  { %2164 = vmatprep.subr.bf16.mxu1 %v2418_v25  ;;  %1856 = vmatpush1.bf16.msra.mxu0 %v2458_v26  ;;  %v1579_v25 = vld [vmem:[%s2913_s16] sm:$0x3] }
 0x25b   :  { %1857 = vmatprep.subr.bf16.mxu0 %v2463_v31  ;;  %v1584_v26 = vrot.slane %v1579_v25, %v2816_v1 }
 0x25d   :  { %2165 = vmatpush3.bf16.msra.mxu1 %v2419_v27  ;;  %v1588_v27 = vrot.slane %v1579_v25, %v2822_v4 }
 0x25e   :  { %2166 = vmatprep.subr.bf16.mxu1 %v2420_v28  ;;  %1858 = vmatpush1.bf16.msra.mxu0 %v2461_v30 }
 0x25f   :  { %1859 = vmatprep.subr.bf16.mxu0 %v2466_v32 }
 0x261   :  { %2167 = vmatpush3.bf16.msra.mxu1 %v2421_v29 }
 0x262   :  { %1860 = vmatpush1.bf16.msra.mxu0 %v2464_v33 }
 0x263   :  { %1861 = vmatprep.subr.bf16.mxu0 %v2469_v34 }
 0x264   :  { %1473 = vmatmul.mubr.bf16.vlgmr.msra.gmra.mrb[24].mxu1 %v2860_v11  ;;  %v953_v11 = vld [vmem:[%s2911_s14] sm:$0x7] }
 0x265   :  { %v958_v41 = vrot.slane %v953_v11, %v2816_v1  ;;  %v962_v42 = vrot.slane %v953_v11, %v2822_v4 }
 0x266   :  { %1862 = vmatpush1.bf16.msra.mxu0 %v2467_v35 }
 0x267   :  { %1874 = vmatprep.subr.bf16.mxu0 %v2472_v36 }
 0x2fb   :  { %v1515_v37 = vpop.f32.mrb[4].mxu0 }
 0x2fc   :  { %v2207_v38 = vpop.f32.mrb[5].mxu0 }
 0x2fd   :  { %v1518_v39 = vpop.f32.mrb[6].mxu0 }
 0x2fe   :  { %v2208_v40 = vpop.f32.mrb[7].mxu0 }
 0x317   :  { %v1431_v43 = vpop.f32.mrb[20].mxu1 }
 0x318   :  { %v2209_v44 = vadd.f32 %v1431_v43, %v958_v41  ;;  %v1433_v45 = vpop.f32.mrb[21].mxu1 }
 0x319   :  { %v2210_v46 = vadd.f32 %v1433_v45, %v962_v42  ;;  %v1435_v47 = vpop.f32.mrb[22].mxu1 }
 0x31a   :  { %v2211_v48 = vadd.f32 %v1435_v47, %v958_v41  ;;  %v1437_v49 = vpop.f32.mrb[23].mxu1  ;;  %v1522_v51 = vmax.f32 %v2209_v44, 0.0 }
 0x31b   :  { %v2212_v50 = vadd.f32 %v1437_v49, %v962_v42  ;;  %v1523_v52 = vmax.f32 %v2210_v46, 0.0 }
 0x31c   :  { %v1525_v61 = vmax.f32 %v2211_v48, 0.0 }
 0x31d   :  { %v1526_v53 = vmax.f32 %v2212_v50, 0.0 }
 0x31e   :  { %v1528_v54 = vpack.c.bf16 %v1525_v61, %v1522_v51 }
 0x31f   :  { %v1529_v55 = vpack.c.bf16 %v1526_v53, %v1523_v52 }
 0x321   :  { %1863 = vmatprep.mubr.bf16.mxu0 %v1529_v55 }
 0x322   :  { %1864 = vmatmul.mubr.bf16.vlgmr.msra.gmra.mrb[8].mxu0 %v1528_v54 }
 0x323   :  { %1875 = vmatpush1.bf16.msra.mxu0 %v2470_v56  ;;  %1906 = vmatprep.mubr.bf16.mxu0 %v2612_v0  ;;  %v966_v0 = vrot.slane %v953_v11, %v134_v6 }
 0x324   :  { %1876 = vmatprep.subr.bf16.mxu0 %v2475_v57 }
 0x327   :  { %1877 = vmatpush1.bf16.msra.mxu0 %v2473_v58 }
 0x328   :  { %1878 = vmatprep.subr.bf16.mxu0 %v2478_v59 }
 0x32b   :  { %1879 = vmatpush1.bf16.msra.mxu0 %v2476_v60 }
 0x32c   :  { %1880 = vmatprep.subr.bf16.mxu0 %v2481_v62 }
 0x32f   :  { %1881 = vmatpush1.bf16.msra.mxu0 %v2479_v2 }
 0x330   :  { %1882 = vmatprep.subr.bf16.mxu0 %v2484_v3 }
 0x333   :  { %1883 = vmatpush1.bf16.msra.mxu0 %v2482_v5 }
 0x334   :  { %1884 = vmatprep.subr.bf16.mxu0 %v2487_v7 }
 0x337   :  { %v2168_v10 = vpop.f32.mrb[24].mxu1  ;;  %1885 = vmatpush1.bf16.msra.mxu0 %v2485_v8 }
 0x338   :  { %v2169_v13 = vpop.f32.mrb[25].mxu1  ;;  %1886 = vmatprep.subr.bf16.mxu0 %v2490_v9 }
 0x339   :  { %v2170_v15 = vadd.f32 %v2169_v13, %v2168_v10  ;;  %v2171_v16 = vpop.f32.mrb[26].mxu1 }
 0x33a   :  { %v2172_v17 = vpop.f32.mrb[27].mxu1 }
 0x33b   :  { %v1475_v18 = vadd.f32 %v2170_v15, %v966_v0  ;;  %v2173_v19 = vadd.f32 %v2172_v17, %v2171_v16  ;;  %1887 = vmatpush1.bf16.msra.mxu0 %v2488_v12 }
 0x33c   :  { %1888 = vmatprep.subr.bf16.mxu0 %v2493_v14 }
 0x33d   :  { %v1516_v21 = vadd.f32 %v1515_v37, %v1475_v18  ;;  %v1478_v22 = vadd.f32 %v2173_v19, %v966_v0 }
 0x33f   :  { %v1519_v23 = vadd.f32 %v1518_v39, %v1478_v22  ;;  %1889 = vmatpush1.bf16.msra.mxu0 %v2491_v20  ;;  %v1524_v24 = vmax.f32 %v1516_v21, 0.0 }
 0x341   :  { %v1527_v63 = vmax.f32 %v1519_v23, 0.0 }
 0x343   :  { %v1530_v6 = vpack.c.bf16 %v1527_v63, %v1524_v24 }
 0x345   :  { %1907 = vmatmul.mubr.bf16.vlgmr.msra.gmra.mrb[8].mxu0 %v1530_v6 }
 0x418   :  { %v1908_v28 = vpop.f32.mrb[8].mxu0 }
 0x419   :  { %v2213_v29 = vadd.f32 %v1908_v28, %v1584_v26  ;;  %v1910_v30 = vpop.f32.mrb[9].mxu0 }
 0x41a   :  { %v2214_v31 = vadd.f32 %v1910_v30, %v1588_v27  ;;  %v1912_v32 = vpop.f32.mrb[10].mxu0 }
 0x41b   :  { %v1914_v33 = vpop.f32.mrb[11].mxu0  ;;  %1917 = vmax.xlane.f32.xlu0 %v2213_v29  ;;  %v2215_v34 = vadd.f32 %v1912_v32, %v1584_v26 }
 0x41c   :  { %1935 = vmax.xlane.f32.xlu1 %v2214_v31  ;;  %v2216_v35 = vadd.f32 %v1914_v33, %v1588_v27 }
 0x41f   :  { %1919 = vmax.xlane.f32.xlu0 %v2215_v34 }
 0x420   :  { %1937 = vmax.xlane.f32.xlu1 %v2216_v35 }
 0x4a8   :  { %v1918_v36 = vpop.xlane.xlu0 %1917 }
 0x4a9   :  { %v1921_v37 = vsub.f32 %v2213_v29, %v1918_v36  ;;  %v1936_v38 = vpop.xlane.xlu1 %1935 }
 0x4aa   :  { %v1939_v39 = vsub.f32 %v2214_v31, %v1936_v38 }
 0x4ab   :  { %v1923_v40 = vmul.f32 1.442695, %v1921_v37 }
 0x4ac   :  { %v1941_v1 = vmul.f32 1.442695, %v1939_v39  ;;  %v1920_v11 = vpop.xlane.xlu0 %1919 }
 0x4ad   :  { %2494 = vpow2.f32 %v1923_v40  ;;  %v1922_v4 = vsub.f32 %v2215_v34, %v1920_v11  ;;  %v1938_v41 = vpop.xlane.xlu1 %1937 }
 0x4ae   :  { %v1940_v42 = vsub.f32 %v2216_v35, %v1938_v41  ;;  %2496 = vpow2.f32 %v1941_v1 }
 0x4af   :  { %v1925_v43 = vmul.f32 1.442695, %v1922_v4 }
 0x4b0   :  { %v1943_v44 = vmul.f32 1.442695, %v1940_v42 }
 0x4b1   :  { %2498 = vpow2.f32 %v1925_v43 }
 0x4b2   :  { %2500 = vpow2.f32 %v1943_v44 }
 0x4b7   :  { %v2495_v45 = vpop.eup %2494 }
 0x4b8   :  { %1927 = vadd.xlane.f32.xlu0 %v2495_v45  ;;  %v2497_v46 = vpop.eup %2496 }
 0x4bb   :  { %v2499_v47 = vpop.eup %2498 }
 0x4bc   :  { %1945 = vadd.xlane.f32.xlu0 %v2497_v46  ;;  %1929 = vadd.xlane.f32.xlu1 %v2499_v47  ;;  %v2501_v48 = vpop.eup %2500 }
 0x4c0   :  { %1947 = vadd.xlane.f32.xlu1 %v2501_v48 }
 0x545   :  { %v1928_v49 = vpop.xlane.xlu0 %1927 }
 0x546   :  { %2502 = vrcp.f32 %v1928_v49 }
 0x549   :  { %v1930_v50 = vpop.xlane.xlu1 %1929  ;;  %v1946_v51 = vpop.xlane.xlu0 %1945 }
 0x54a   :  { %2504 = vrcp.f32 %v1930_v50 }
 0x54b   :  { %2506 = vrcp.f32 %v1946_v51 }
 0x54d   :  { %v1948_v61 = vpop.xlane.xlu1 %1947 }
 0x54e   :  { %2508 = vrcp.f32 %v1948_v61 }
 0x550   :  { %v2503_v52 = vpop.eup %2502 }
 0x551   :  { %v1933_v53 = vmul.f32 %v2503_v52, %v2495_v45 }
 0x553   :  { %1953 = vst [vmem:[%s2914_s17] sm:$0xff] %v1933_v53 }
 0x554   :  { %v2505_v54 = vpop.eup %2504 }
 0x555   :  { %v2507_v55 = vpop.eup %2506  ;;  %v1934_v56 = vmul.f32 %v2505_v54, %v2499_v47 }
 0x556   :  { %v1951_v57 = vmul.f32 %v2507_v55, %v2497_v46 }
 0x557   :  { %1955 = vst [vmem:[%s2914_s17 + $0x10] sm:$0xff] %v1934_v56 }
 0x558   :  { %v2509_v58 = vpop.eup %2508  ;;  %1954 = vst [vmem:[%s2914_s17 + $0x8] sm:$0xff] %v1951_v57 }
 0x559   :  { %v1952_v59 = vmul.f32 %v2509_v58, %v2501_v48 }
 0x55b   :  { %1956 = vst [vmem:[%s2914_s17 + $0x18] sm:$0xff] %v1952_v59 }
 0x55c   :  { %1961 = vsyncpa [#allocation3], 1 }
 0x55d   :  { %1962 = vsyncpa [#allocation5], 1 }
 0x55e   :  { %1963 = vsyncpa [#allocation8], 1 }

</bundles_post_ra>
